<compile_context>
chip_gen: v7x
topology: tpu7x:2x2x1
jax: 0.10.0
libtpu: 0.0.40
codegen_flags: <defaults>
</compile_context>

<pallas_src>
import functools
import math

import jax
import jax.numpy as jnp
from jax.experimental import pallas as pl
from jax.experimental.pallas import tpu as pltpu


# ----------------------------------------------------------------------------
# Tiling configuration (MXU-aligned; clamped to full dims for small shapes)
# ----------------------------------------------------------------------------
_MAX_TM = 256            # row tile (multiple of 256 for v6e/v7x MXU height)
_MAX_TN = 512            # output-column tile (lane-dense, multiple of 128)
_MAX_TK = 512            # reduction tile
_LN_FUSE_MAX_N = 1024    # fuse residual+LayerNorm epilogue when full N fits one tile
_VMEM_LIMIT = 64 * 1024 * 1024  # explicit budget, valid on v5e/v6e (128 MiB) and v7x (64 MiB)


def _round_up(x, m):
    return (x + m - 1) // m * m


def _pad_axis(x, target, axis):
    pad = target - x.shape[axis]
    if pad == 0:
        return x
    widths = [(0, 0)] * x.ndim
    widths[axis] = (0, pad)
    return jnp.pad(x, widths)


def _row_tile(M):
    """Pick a row tile: full M (rounded to 8) when small, else _MAX_TM."""
    M8 = _round_up(M, 8)
    tm = M8 if M8 <= _MAX_TM else _MAX_TM
    Mp = _round_up(M8, tm)
    return Mp, tm


# ----------------------------------------------------------------------------
# Pallas kernels
# ----------------------------------------------------------------------------

def _matmul_kernel(x_ref, w_ref, b_ref, o_ref, acc_ref, *, activation):
    """Tiled o = act(x @ w + b); grid = (M//tm, N//tn, K//tk), K last."""
    @pl.when(pl.program_id(2) == 0)
    def _init():
        acc_ref[...] = jnp.zeros_like(acc_ref)

    acc_ref[...] += jnp.dot(x_ref[...], w_ref[...],
                            preferred_element_type=jnp.float32)

    @pl.when(pl.program_id(2) == pl.num_programs(2) - 1)
    def _finalize():
        y = acc_ref[...] + b_ref[...].astype(jnp.float32)
        if activation == "gelu":
            # TODO(synk): torch nn.GELU default is exact erf; tanh approx used here.
            y = jax.nn.gelu(y, approximate=True)
        o_ref[...] = y.astype(o_ref.dtype)


def _matmul_ln_kernel(x_ref, w_ref, b_ref, res_ref, g_ref, bb_ref,
                      o_ref, acc_ref, *, eps):
    """Tiled o = LayerNorm(res + x @ w + b); grid = (M//tm, K//tk), full-N tile."""
    @pl.when(pl.program_id(1) == 0)
    def _init():
        acc_ref[...] = jnp.zeros_like(acc_ref)

    acc_ref[...] += jnp.dot(x_ref[...], w_ref[...],
                            preferred_element_type=jnp.float32)

    @pl.when(pl.program_id(1) == pl.num_programs(1) - 1)
    def _finalize():
        z = (acc_ref[...] + b_ref[...].astype(jnp.float32)
             + res_ref[...].astype(jnp.float32))
        mu = jnp.mean(z, axis=-1, keepdims=True)
        var = jnp.mean((z - mu) * (z - mu), axis=-1, keepdims=True)
        zn = (z - mu) * jax.lax.rsqrt(var + eps)
        o_ref[...] = (zn * g_ref[...].astype(jnp.float32)
                      + bb_ref[...].astype(jnp.float32)).astype(o_ref.dtype)


def _add_ln_kernel(x_ref, y_ref, g_ref, b_ref, o_ref, *, eps):
    """Fallback o = LayerNorm(x + y) (used only when N is too wide to fuse)."""
    z = x_ref[...].astype(jnp.float32) + y_ref[...].astype(jnp.float32)
    mu = jnp.mean(z, axis=-1, keepdims=True)
    var = jnp.mean((z - mu) * (z - mu), axis=-1, keepdims=True)
    zn = (z - mu) * jax.lax.rsqrt(var + eps)
    o_ref[...] = (zn * g_ref[...].astype(jnp.float32)
                  + b_ref[...].astype(jnp.float32)).astype(o_ref.dtype)


def _attention_kernel(qkv_ref, bias_ref, o_ref, *, num_head, scale):
    """All heads of one batch. qkv_ref: (S, 3H) packed Q|K|V rows;
    bias_ref: (1, 1, S) additive mask bias; o_ref: (S, H) lane-dense output."""
    qkv = qkv_ref[...].astype(jnp.float32)       # (S, 3H)
    bias = bias_ref[0]                           # (1, S), broadcasts over queries
    S = qkv.shape[0]
    H = qkv.shape[1] // 3
    dh = H // num_head

    outs = []
    for h in range(num_head):                    # static unroll over heads
        q = qkv[:, h * dh:(h + 1) * dh]
        k = qkv[:, H + h * dh:H + (h + 1) * dh]
        v = qkv[:, 2 * H + h * dh:2 * H + (h + 1) * dh]
        s = jax.lax.dot_general(q, k, (((1,), (1,)), ((), ())),
                                preferred_element_type=jnp.float32) * scale
        s = s + bias
        s = s - jnp.max(s, axis=-1, keepdims=True)
        p = jnp.exp(s)
        p = p * pl.reciprocal(jnp.sum(p, axis=-1, keepdims=True), approx=True)
        outs.append(jnp.dot(p, v, preferred_element_type=jnp.float32))
    o_ref[...] = jnp.concatenate(outs, axis=-1).astype(o_ref.dtype)


# ----------------------------------------------------------------------------
# Kernel wrappers
# ----------------------------------------------------------------------------

def linear(x, w, b, *, activation=None):
    """act(x @ w + b). x:(M,K), w:(K,N), b:(N,). Tiled over (M, N, K)."""
    M, K = x.shape
    N = w.shape[1]
    Mp, tm = _row_tile(M)
    tn = N if N <= _MAX_TN else _MAX_TN
    tk = K if K <= _MAX_TK else _MAX_TK
    Np = _round_up(N, tn)
    Kp = _round_up(K, tk)

    xp = _pad_axis(_pad_axis(x, Mp, 0), Kp, 1)
    wp = _pad_axis(_pad_axis(w, Kp, 0), Np, 1)
    bp = _pad_axis(b.reshape(1, N), Np, 1)

    out = pl.pallas_call(
        functools.partial(_matmul_kernel, activation=activation),
        out_shape=jax.ShapeDtypeStruct((Mp, Np), x.dtype),
        grid=(Mp // tm, Np // tn, Kp // tk),
        in_specs=[
            pl.BlockSpec((tm, tk), lambda i, j, k: (i, k)),
            pl.BlockSpec((tk, tn), lambda i, j, k: (k, j)),
            pl.BlockSpec((1, tn), lambda i, j, k: (0, j)),
        ],
        out_specs=pl.BlockSpec((tm, tn), lambda i, j, k: (i, j)),
        scratch_shapes=[pltpu.VMEM((tm, tn), jnp.float32)],
        compiler_params=pltpu.CompilerParams(
            dimension_semantics=("parallel", "parallel", "arbitrary"),
            vmem_limit_bytes=_VMEM_LIMIT),
    )(xp, wp, bp)
    return out[:M, :N]


def add_layernorm(x, y, gamma, beta, *, eps=1e-5):
    """Fallback LayerNorm(x + y) over the last dim (only used for very wide N)."""
    M, H = x.shape
    Mp, tm = _row_tile(M)
    xp = _pad_axis(x, Mp, 0)
    yp = _pad_axis(y, Mp, 0)
    out = pl.pallas_call(
        functools.partial(_add_ln_kernel, eps=eps),
        out_shape=jax.ShapeDtypeStruct((Mp, H), x.dtype),
        grid=(Mp // tm,),
        in_specs=[
            pl.BlockSpec((tm, H), lambda i: (i, 0)),
            pl.BlockSpec((tm, H), lambda i: (i, 0)),
            pl.BlockSpec((1, H), lambda i: (0, 0)),
            pl.BlockSpec((1, H), lambda i: (0, 0)),
        ],
        out_specs=pl.BlockSpec((tm, H), lambda i: (i, 0)),
        compiler_params=pltpu.CompilerParams(
            dimension_semantics=("parallel",),
            vmem_limit_bytes=_VMEM_LIMIT),
    )(xp, yp, gamma.reshape(1, H), beta.reshape(1, H))
    return out[:M]


def linear_add_layernorm(x, w, b, res, gamma, beta, *, eps=1e-5):
    """LayerNorm(res + x @ w + b) with the residual+LN fused into the matmul
    epilogue (requires the full N in one tile; falls back otherwise)."""
    M, K = x.shape
    N = w.shape[1]
    if N > _LN_FUSE_MAX_N:
        return add_layernorm(res, linear(x, w, b), gamma, beta, eps=eps)

    Mp, tm = _row_tile(M)
    tk = K if K <= _MAX_TK else _MAX_TK
    Kp = _round_up(K, tk)

    xp = _pad_axis(_pad_axis(x, Mp, 0), Kp, 1)
    wp = _pad_axis(w, Kp, 0)
    rp = _pad_axis(res, Mp, 0)

    out = pl.pallas_call(
        functools.partial(_matmul_ln_kernel, eps=eps),
        out_shape=jax.ShapeDtypeStruct((Mp, N), x.dtype),
        grid=(Mp // tm, Kp // tk),
        in_specs=[
            pl.BlockSpec((tm, tk), lambda i, k: (i, k)),
            pl.BlockSpec((tk, N), lambda i, k: (k, 0)),
            pl.BlockSpec((1, N), lambda i, k: (0, 0)),
            pl.BlockSpec((tm, N), lambda i, k: (i, 0)),
            pl.BlockSpec((1, N), lambda i, k: (0, 0)),
            pl.BlockSpec((1, N), lambda i, k: (0, 0)),
        ],
        out_specs=pl.BlockSpec((tm, N), lambda i, k: (i, 0)),
        scratch_shapes=[pltpu.VMEM((tm, N), jnp.float32)],
        compiler_params=pltpu.CompilerParams(
            dimension_semantics=("parallel", "arbitrary"),
            vmem_limit_bytes=_VMEM_LIMIT),
    )(xp, wp, b.reshape(1, N), rp, gamma.reshape(1, N), beta.reshape(1, N))
    return out[:M]


def attention(qkv2d, bias, *, B, S, num_head):
    """qkv2d: (B*S, 3H) packed Q|K|V; bias: (B, 1, S) additive mask. -> (B*S, H)."""
    M, threeH = qkv2d.shape
    H = threeH // 3
    scale = 1.0 / math.sqrt(H // num_head)
    return pl.pallas_call(
        functools.partial(_attention_kernel, num_head=num_head, scale=scale),
        out_shape=jax.ShapeDtypeStruct((M, H), qkv2d.dtype),
        grid=(B,),
        in_specs=[
            pl.BlockSpec((S, threeH), lambda b: (b, 0)),
            pl.BlockSpec((1, 1, S), lambda b: (b, 0, 0)),
        ],
        out_specs=pl.BlockSpec((S, H), lambda b: (b, 0)),
        compiler_params=pltpu.CompilerParams(
            dimension_semantics=("parallel",),
            vmem_limit_bytes=_VMEM_LIMIT),
    )(qkv2d, bias)


# ----------------------------------------------------------------------------
# Model (parameters + forward using the kernels above)
# ----------------------------------------------------------------------------

def init_params(key, *, vocab_size, max_pos, num_segments,
                token_embedding_size, model_hidden, dtype=jnp.bfloat16):
    ff_hidden = model_hidden * 4
    ks = jax.random.split(key, 8)
    n = lambda k, shape: (0.02 * jax.random.normal(k, shape)).astype(dtype)
    z = lambda shape: jnp.zeros(shape, dtype)
    o = lambda shape: jnp.ones(shape, dtype)
    return {
        # ALBERTTokenEmbedding: token + position + segment embeddings
        "tok_emb": n(ks[0], (vocab_size, token_embedding_size)),
        "pos_emb": n(ks[1], (max_pos, token_embedding_size)),
        "seg_emb": n(ks[2], (num_segments, token_embedding_size)),
        # token -> hidden projection
        "proj_w": n(ks[3], (token_embedding_size, model_hidden)),
        "proj_b": z((model_hidden,)),
        # shared transformer layer (num_group = 1)
        "wqkv": n(ks[4], (model_hidden, 3 * model_hidden)),
        "bqkv": z((3 * model_hidden,)),
        "wo": n(ks[5], (model_hidden, model_hidden)),
        "bo": z((model_hidden,)),
        "ln1_g": o((model_hidden,)),
        "ln1_b": z((model_hidden,)),
        "w1": n(ks[6], (model_hidden, ff_hidden)),
        "b1": z((ff_hidden,)),
        "w2": n(ks[7], (ff_hidden, model_hidden)),
        "b2": z((model_hidden,)),
        "ln2_g": o((model_hidden,)),
        "ln2_b": z((model_hidden,)),
    }


def transformer_layer(params, x2d, bias, *, B, S, num_head, eps=1e-5):
    # Multi-head self attention: packed QKV projection, heads split in-kernel,
    # output projection with fused residual-add + LayerNorm epilogue.
    qkv = linear(x2d, params["wqkv"], params["bqkv"])              # (B*S, 3H)
    attn = attention(qkv, bias, B=B, S=S, num_head=num_head)       # (B*S, H)
    x2d = linear_add_layernorm(attn, params["wo"], params["bo"],
                               x2d, params["ln1_g"], params["ln1_b"], eps=eps)

    # Position-wise feed forward: W1 + bias + GELU fused, W2 with fused
    # residual-add + LayerNorm epilogue.
    f = linear(x2d, params["w1"], params["b1"], activation="gelu")
    x2d = linear_add_layernorm(f, params["w2"], params["b2"],
                               x2d, params["ln2_g"], params["ln2_b"], eps=eps)
    return x2d


def albert_forward(params, input_ids, segment_ids=None, mask=None, *,
                   layer_iter, num_group, num_head):
    B, S = input_ids.shape
    # ---- ALBERTTokenEmbedding (gathers: plain-JAX glue) ----
    tok = params["tok_emb"][input_ids]                             # (B, S, E)
    pos = params["pos_emb"][:S][None, :, :]                        # (1, S, E)
    emb = tok + pos
    if segment_ids is not None:
        emb = emb + params["seg_emb"][segment_ids]

    E = emb.shape[-1]
    H = params["proj_w"].shape[1]

    # ---- token -> hidden projection (Pallas tiled matmul, bf16 in / f32 acc) ----
    x2d = linear(emb.reshape(B * S, E), params["proj_w"], params["proj_b"])

    # ---- attention mask -> tiny additive bias (B, 1, S); expanded in-kernel ----
    if mask is None:
        bias = jnp.zeros((B, 1, S), jnp.float32)
    else:
        m = mask.astype(jnp.float32).reshape(B, 1, S)
        bias = (1.0 - m) * -1e9

    # ---- shared-parameter transformer, repeated layer_iter times ----
    # TODO(synk): hoist this loop into a single pallas_call with a leading
    # 'arbitrary' grid axis over layers so the shared ALBERT weights stay
    # resident in VMEM across all iterations (pays off when the activation
    # slab also fits VMEM; requires a fully fused per-layer body).
    for i in range(layer_iter):
        group_index = i * num_group // layer_iter
        assert group_index == 0  # num_group = 1: single shared layer
        x2d = transformer_layer(params, x2d, bias, B=B, S=S, num_head=num_head)

    return x2d.reshape(B, S, H).astype(jnp.float32)


# ----------------------------------------------------------------------------
# Main
# ----------------------------------------------------------------------------

if __name__ == "__main__":
    # Small configuration consistent with the module's constraints
    # (model_hidden % num_head == 0, feed_forward = 4 * model_hidden).
    VOCAB = 50
    B, S = 2, 8
    TOKEN_EMB = 32
    HIDDEN = 64
    NUM_HEAD = 4
    LAYER_ITER = 3
    NUM_GROUP = 1

    key = jax.random.PRNGKey(0)
    kp, kid, kseg = jax.random.split(key, 3)

    params = init_params(
        kp, vocab_size=VOCAB, max_pos=S, num_segments=2,
        token_embedding_size=TOKEN_EMB, model_hidden=HIDDEN)

    input_ids = jax.random.randint(kid, (B, S), 0, VOCAB, dtype=jnp.int32)
    segment_ids = jax.random.randint(kseg, (B, S), 0, 2, dtype=jnp.int32)
    mask = jnp.ones((B, S), jnp.int32)  # 1 = attend (no padding)

    fwd = jax.jit(functools.partial(
        albert_forward, layer_iter=LAYER_ITER, num_group=NUM_GROUP,
        num_head=NUM_HEAD))
    out = jax.block_until_ready(fwd(params, input_ids, segment_ids, mask))

    assert out.shape == (B, S, HIDDEN)
    assert jnp.all(jnp.isfinite(out))
    print("KERNEL_OK")
</pallas_src>

<mosaic_0001>
module attributes {stable_mosaic.version = 11 : i64} {
  func.func @_matmul_kernel(%arg0: i32, %arg1: i32, %arg2: i32, %arg3: memref<16x32xbf16, #tpu.memory_space<vmem>>, %arg4: memref<32x64xbf16, #tpu.memory_space<vmem>>, %arg5: memref<1x64xbf16, #tpu.memory_space<vmem>>, %arg6: memref<16x64xbf16, #tpu.memory_space<vmem>>, %arg7: memref<16x64xf32, #tpu.memory_space<vmem>>) attributes {dimension_semantics = [#tpu.dimension_semantics<parallel>, #tpu.dimension_semantics<parallel>, #tpu.dimension_semantics<arbitrary>], iteration_bounds = array<i64: 1, 1, 1>, scalar_prefetch = 0 : i64, scratch_operands = 1 : i64, tpu.core_type = #tpu.core_type<tc>, window_params = [{transform_indices = @transform_0, window_bounds = array<i64: 16, 32>}, {transform_indices = @transform_1, window_bounds = array<i64: 32, 64>}, {transform_indices = @transform_2, window_bounds = array<i64: 1, 64>}, {transform_indices = @transform_3, window_bounds = array<i64: 16, 64>}]} {
    %c0_i32 = arith.constant 0 : i32
    %0 = arith.cmpi eq, %arg2, %c0_i32 : i32
    %1 = arith.extui %0 : i1 to i32
    %c0_i32_0 = arith.constant 0 : i32
    %2 = arith.cmpi ne, %1, %c0_i32_0 : i32
    scf.if %2 {
      %cst_10 = arith.constant 0.000000e+00 : f32
      %12 = vector.broadcast %cst_10 : f32 to vector<16x64xf32>
      %c0_11 = arith.constant 0 : index
      %c0_12 = arith.constant 0 : index
      %13 = vector.load %arg7[%c0_11, %c0_12] : memref<16x64xf32, #tpu.memory_space<vmem>>, vector<16x64xf32>
      tpu.vector_store %arg7[%c0_11, %c0_12], %12 {strides = array<i32>} : memref<16x64xf32, #tpu.memory_space<vmem>>, vector<16x64xf32>,
    } else {
    }
    %c0 = arith.constant 0 : index
    %c0_1 = arith.constant 0 : index
    %3 = vector.load %arg7[%c0, %c0_1] : memref<16x64xf32, #tpu.memory_space<vmem>>, vector<16x64xf32>
    %c0_2 = arith.constant 0 : index
    %c0_3 = arith.constant 0 : index
    %4 = vector.load %arg3[%c0_2, %c0_3] : memref<16x32xbf16, #tpu.memory_space<vmem>>, vector<16x32xbf16>
    %c0_4 = arith.constant 0 : index
    %c0_5 = arith.constant 0 : index
    %5 = vector.load %arg4[%c0_4, %c0_5] : memref<32x64xbf16, #tpu.memory_space<vmem>>, vector<32x64xbf16>
    %cst = arith.constant dense<0.000000e+00> : vector<16x64xf32>
    %6 = tpu.matmul %4, %5, %cst {dimension_numbers = #tpu.dot_dimension_numbers<[1], [0], [0], [1], [0, 0, 1, 1], [], []>} : vector<16x32xbf16>, vector<32x64xbf16>, vector<16x64xf32> -> vector<16x64xf32>
    %7 = arith.addf %3, %6 : vector<16x64xf32>
    %c0_6 = arith.constant 0 : index
    %c0_7 = arith.constant 0 : index
    %8 = vector.load %arg7[%c0_6, %c0_7] : memref<16x64xf32, #tpu.memory_space<vmem>>, vector<16x64xf32>
    tpu.vector_store %arg7[%c0_6, %c0_7], %7 {strides = array<i32>} : memref<16x64xf32, #tpu.memory_space<vmem>>, vector<16x64xf32>,
    %c0_i32_8 = arith.constant 0 : i32
    %9 = arith.cmpi eq, %arg2, %c0_i32_8 : i32
    %10 = arith.extui %9 : i1 to i32
    %c0_i32_9 = arith.constant 0 : i32
    %11 = arith.cmpi ne, %10, %c0_i32_9 : i32
    scf.if %11 {
      %c0_10 = arith.constant 0 : index
      %c0_11 = arith.constant 0 : index
      %12 = vector.load %arg7[%c0_10, %c0_11] : memref<16x64xf32, #tpu.memory_space<vmem>>, vector<16x64xf32>
      %c0_12 = arith.constant 0 : index
      %c0_13 = arith.constant 0 : index
      %13 = vector.load %arg5[%c0_12, %c0_13] : memref<1x64xbf16, #tpu.memory_space<vmem>>, vector<1x64xbf16>
      %14 = arith.extf %13 : vector<1x64xbf16> to vector<1x64xf32>
      %15 = vector.broadcast %14 : vector<1x64xf32> to vector<16x64xf32>
      %16 = arith.addf %12, %15 : vector<16x64xf32>
      %17 = arith.truncf %16 : vector<16x64xf32> to vector<16x64xbf16>
      %c0_14 = arith.constant 0 : index
      %c0_15 = arith.constant 0 : index
      %18 = vector.load %arg6[%c0_14, %c0_15] : memref<16x64xbf16, #tpu.memory_space<vmem>>, vector<16x64xbf16>
      tpu.vector_store %arg6[%c0_14, %c0_15], %17 {strides = array<i32>} : memref<16x64xbf16, #tpu.memory_space<vmem>>, vector<16x64xbf16>,
    } else {
    }
    return
  }
  func.func @transform_0(%arg0: i32, %arg1: i32, %arg2: i32) -> (i32, i32) {
    %c0_i32 = arith.constant 0 : i32
    return %arg0, %arg2 : i32, i32
  }
  func.func @transform_1(%arg0: i32, %arg1: i32, %arg2: i32) -> (i32, i32) {
    %c0_i32 = arith.constant 0 : i32
    return %arg2, %arg1 : i32, i32
  }
  func.func @transform_2(%arg0: i32, %arg1: i32, %arg2: i32) -> (i32, i32) {
    %c0_i32 = arith.constant 0 : i32
    %c0_i32_0 = arith.constant 0 : i32
    return %c0_i32, %arg1 : i32, i32
  }
  func.func @transform_3(%arg0: i32, %arg1: i32, %arg2: i32) -> (i32, i32) {
    %c0_i32 = arith.constant 0 : i32
    return %arg0, %arg1 : i32, i32
  }
}

module attributes {stable_mosaic.version = 11 : i64} {
  func.func @_matmul_ln_kernel(%arg0: i32, %arg1: i32, %arg2: memref<16x64xbf16, #tpu.memory_space<vmem>>, %arg3: memref<64x64xbf16, #tpu.memory_space<vmem>>, %arg4: memref<1x64xbf16, #tpu.memory_space<vmem>>, %arg5: memref<16x64xbf16, #tpu.memory_space<vmem>>, %arg6: memref<1x64xbf16, #tpu.memory_space<vmem>>, %arg7: memref<1x64xbf16, #tpu.memory_space<vmem>>, %arg8: memref<16x64xbf16, #tpu.memory_space<vmem>>, %arg9: memref<16x64xf32, #tpu.memory_space<vmem>>) attributes {dimension_semantics = [#tpu.dimension_semantics<parallel>, #tpu.dimension_semantics<arbitrary>], iteration_bounds = array<i64: 1, 1>, scalar_prefetch = 0 : i64, scratch_operands = 1 : i64, tpu.core_type = #tpu.core_type<tc>, window_params = [{transform_indices = @transform_0, window_bounds = array<i64: 16, 64>}, {transform_indices = @transform_1, window_bounds = array<i64: 64, 64>}, {pipeline_mode = #tpu.pipeline_mode<synchronous>, transform_indices = @transform_2, window_bounds = array<i64: 1, 64>}, {transform_indices = @transform_3, window_bounds = array<i64: 16, 64>}, {pipeline_mode = #tpu.pipeline_mode<synchronous>, transform_indices = @transform_4, window_bounds = array<i64: 1, 64>}, {pipeline_mode = #tpu.pipeline_mode<synchronous>, transform_indices = @transform_5, window_bounds = array<i64: 1, 64>}, {transform_indices = @transform_6, window_bounds = array<i64: 16, 64>}]} {
    %c0_i32 = arith.constant 0 : i32
    %0 = arith.cmpi eq, %arg1, %c0_i32 : i32
    %1 = arith.extui %0 : i1 to i32
    %c0_i32_0 = arith.constant 0 : i32
    %2 = arith.cmpi ne, %1, %c0_i32_0 : i32
    scf.if %2 {
      %cst_10 = arith.constant 0.000000e+00 : f32
      %12 = vector.broadcast %cst_10 : f32 to vector<16x64xf32>
      %c0_11 = arith.constant 0 : index
      %c0_12 = arith.constant 0 : index
      %13 = vector.load %arg9[%c0_11, %c0_12] : memref<16x64xf32, #tpu.memory_space<vmem>>, vector<16x64xf32>
      tpu.vector_store %arg9[%c0_11, %c0_12], %12 {strides = array<i32>} : memref<16x64xf32, #tpu.memory_space<vmem>>, vector<16x64xf32>,
    } else {
    }
    %c0 = arith.constant 0 : index
    %c0_1 = arith.constant 0 : index
    %3 = vector.load %arg9[%c0, %c0_1] : memref<16x64xf32, #tpu.memory_space<vmem>>, vector<16x64xf32>
    %c0_2 = arith.constant 0 : index
    %c0_3 = arith.constant 0 : index
    %4 = vector.load %arg2[%c0_2, %c0_3] : memref<16x64xbf16, #tpu.memory_space<vmem>>, vector<16x64xbf16>
    %c0_4 = arith.constant 0 : index
    %c0_5 = arith.constant 0 : index
    %5 = vector.load %arg3[%c0_4, %c0_5] : memref<64x64xbf16, #tpu.memory_space<vmem>>, vector<64x64xbf16>
    %cst = arith.constant dense<0.000000e+00> : vector<16x64xf32>
    %6 = tpu.matmul %4, %5, %cst {dimension_numbers = #tpu.dot_dimension_numbers<[1], [0], [0], [1], [0, 0, 1, 1], [], []>} : vector<16x64xbf16>, vector<64x64xbf16>, vector<16x64xf32> -> vector<16x64xf32>
    %7 = arith.addf %3, %6 : vector<16x64xf32>
    %c0_6 = arith.constant 0 : index
    %c0_7 = arith.constant 0 : index
    %8 = vector.load %arg9[%c0_6, %c0_7] : memref<16x64xf32, #tpu.memory_space<vmem>>, vector<16x64xf32>
    tpu.vector_store %arg9[%c0_6, %c0_7], %7 {strides = array<i32>} : memref<16x64xf32, #tpu.memory_space<vmem>>, vector<16x64xf32>,
    %c0_i32_8 = arith.constant 0 : i32
    %9 = arith.cmpi eq, %arg1, %c0_i32_8 : i32
    %10 = arith.extui %9 : i1 to i32
    %c0_i32_9 = arith.constant 0 : i32
    %11 = arith.cmpi ne, %10, %c0_i32_9 : i32
    scf.if %11 {
      %c0_10 = arith.constant 0 : index
      %c0_11 = arith.constant 0 : index
      %12 = vector.load %arg9[%c0_10, %c0_11] : memref<16x64xf32, #tpu.memory_space<vmem>>, vector<16x64xf32>
      %c0_12 = arith.constant 0 : index
      %c0_13 = arith.constant 0 : index
      %13 = vector.load %arg4[%c0_12, %c0_13] : memref<1x64xbf16, #tpu.memory_space<vmem>>, vector<1x64xbf16>
      %14 = arith.extf %13 : vector<1x64xbf16> to vector<1x64xf32>
      %15 = vector.broadcast %14 : vector<1x64xf32> to vector<16x64xf32>
      %16 = arith.addf %12, %15 : vector<16x64xf32>
      %c0_14 = arith.constant 0 : index
      %c0_15 = arith.constant 0 : index
      %17 = vector.load %arg5[%c0_14, %c0_15] : memref<16x64xbf16, #tpu.memory_space<vmem>>, vector<16x64xbf16>
      %18 = arith.extf %17 : vector<16x64xbf16> to vector<16x64xf32>
      %19 = arith.addf %16, %18 : vector<16x64xf32>
      %cst_16 = arith.constant dense<0.000000e+00> : vector<16xf32>
      %20 = vector.multi_reduction <add>, %19, %cst_16 [1] : vector<16x64xf32> to vector<16xf32>
      %21 = vector.shape_cast %20 : vector<16xf32> to vector<16x1xf32>
      %cst_17 = arith.constant 6.400000e+01 : f32
      %22 = vector.broadcast %cst_17 : f32 to vector<16x1xf32>
      %23 = arith.divf %21, %22 : vector<16x1xf32>
      %24 = vector.broadcast %23 : vector<16x1xf32> to vector<16x64xf32>
      %25 = arith.subf %19, %24 : vector<16x64xf32>
      %26 = vector.broadcast %23 : vector<16x1xf32> to vector<16x64xf32>
      %27 = arith.subf %19, %26 : vector<16x64xf32>
      %28 = arith.mulf %25, %27 : vector<16x64xf32>
      %cst_18 = arith.constant dense<0.000000e+00> : vector<16xf32>
      %29 = vector.multi_reduction <add>, %28, %cst_18 [1] : vector<16x64xf32> to vector<16xf32>
      %30 = vector.shape_cast %29 : vector<16xf32> to vector<16x1xf32>
      %cst_19 = arith.constant 6.400000e+01 : f32
      %31 = vector.broadcast %cst_19 : f32 to vector<16x1xf32>
      %32 = arith.divf %30, %31 : vector<16x1xf32>
      %33 = vector.broadcast %23 : vector<16x1xf32> to vector<16x64xf32>
      %34 = arith.subf %19, %33 : vector<16x64xf32>
      %cst_20 = arith.constant 9.99999974E-6 : f32
      %35 = vector.broadcast %cst_20 : f32 to vector<16x1xf32>
      %36 = arith.addf %32, %35 : vector<16x1xf32>
      %37 = math.rsqrt %36 : vector<16x1xf32>
      %38 = vector.broadcast %37 : vector<16x1xf32> to vector<16x64xf32>
      %39 = arith.mulf %34, %38 : vector<16x64xf32>
      %c0_21 = arith.constant 0 : index
      %c0_22 = arith.constant 0 : index
      %40 = vector.load %arg6[%c0_21, %c0_22] : memref<1x64xbf16, #tpu.memory_space<vmem>>, vector<1x64xbf16>
      %41 = arith.extf %40 : vector<1x64xbf16> to vector<1x64xf32>
      %42 = vector.broadcast %41 : vector<1x64xf32> to vector<16x64xf32>
      %43 = arith.mulf %39, %42 : vector<16x64xf32>
      %c0_23 = arith.constant 0 : index
      %c0_24 = arith.constant 0 : index
      %44 = vector.load %arg7[%c0_23, %c0_24] : memref<1x64xbf16, #tpu.memory_space<vmem>>, vector<1x64xbf16>
      %45 = arith.extf %44 : vector<1x64xbf16> to vector<1x64xf32>
      %46 = vector.broadcast %45 : vector<1x64xf32> to vector<16x64xf32>
      %47 = arith.addf %43, %46 : vector<16x64xf32>
      %48 = arith.truncf %47 : vector<16x64xf32> to vector<16x64xbf16>
      %c0_25 = arith.constant 0 : index
      %c0_26 = arith.constant 0 : index
      %49 = vector.load %arg8[%c0_25, %c0_26] : memref<16x64xbf16, #tpu.memory_space<vmem>>, vector<16x64xbf16>
      tpu.vector_store %arg8[%c0_25, %c0_26], %48 {strides = array<i32>} : memref<16x64xbf16, #tpu.memory_space<vmem>>, vector<16x64xbf16>,
    } else {
    }
    return
  }
  func.func @transform_0(%arg0: i32, %arg1: i32) -> (i32, i32) {
    %c0_i32 = arith.constant 0 : i32
    return %arg0, %arg1 : i32, i32
  }
  func.func @transform_1(%arg0: i32, %arg1: i32) -> (i32, i32) {
    %c0_i32 = arith.constant 0 : i32
    %c0_i32_0 = arith.constant 0 : i32
    return %arg1, %c0_i32 : i32, i32
  }
  func.func @transform_2(%arg0: i32, %arg1: i32) -> (i32, i32) {
    %c0_i32 = arith.constant 0 : i32
    %c0_i32_0 = arith.constant 0 : i32
    %c0_i32_1 = arith.constant 0 : i32
    return %c0_i32, %c0_i32_0 : i32, i32
  }
  func.func @transform_3(%arg0: i32, %arg1: i32) -> (i32, i32) {
    %c0_i32 = arith.constant 0 : i32
    %c0_i32_0 = arith.constant 0 : i32
    return %arg0, %c0_i32 : i32, i32
  }
  func.func @transform_4(%arg0: i32, %arg1: i32) -> (i32, i32) {
    %c0_i32 = arith.constant 0 : i32
    %c0_i32_0 = arith.constant 0 : i32
    %c0_i32_1 = arith.constant 0 : i32
    return %c0_i32, %c0_i32_0 : i32, i32
  }
  func.func @transform_5(%arg0: i32, %arg1: i32) -> (i32, i32) {
    %c0_i32 = arith.constant 0 : i32
    %c0_i32_0 = arith.constant 0 : i32
    %c0_i32_1 = arith.constant 0 : i32
    return %c0_i32, %c0_i32_0 : i32, i32
  }
  func.func @transform_6(%arg0: i32, %arg1: i32) -> (i32, i32) {
    %c0_i32 = arith.constant 0 : i32
    %c0_i32_0 = arith.constant 0 : i32
    return %arg0, %c0_i32 : i32, i32
  }
}

module attributes {stable_mosaic.version = 11 : i64} {
  func.func @_matmul_kernel(%arg0: i32, %arg1: i32, %arg2: i32, %arg3: memref<16x64xbf16, #tpu.memory_space<vmem>>, %arg4: memref<64x192xbf16, #tpu.memory_space<vmem>>, %arg5: memref<1x192xbf16, #tpu.memory_space<vmem>>, %arg6: memref<16x192xbf16, #tpu.memory_space<vmem>>, %arg7: memref<16x192xf32, #tpu.memory_space<vmem>>) attributes {dimension_semantics = [#tpu.dimension_semantics<parallel>, #tpu.dimension_semantics<parallel>, #tpu.dimension_semantics<arbitrary>], iteration_bounds = array<i64: 1, 1, 1>, scalar_prefetch = 0 : i64, scratch_operands = 1 : i64, tpu.core_type = #tpu.core_type<tc>, window_params = [{transform_indices = @transform_0, window_bounds = array<i64: 16, 64>}, {transform_indices = @transform_1, window_bounds = array<i64: 64, 192>}, {transform_indices = @transform_2, window_bounds = array<i64: 1, 192>}, {transform_indices = @transform_3, window_bounds = array<i64: 16, 192>}]} {
    %c0_i32 = arith.constant 0 : i32
    %0 = arith.cmpi eq, %arg2, %c0_i32 : i32
    %1 = arith.extui %0 : i1 to i32
    %c0_i32_0 = arith.constant 0 : i32
    %2 = arith.cmpi ne, %1, %c0_i32_0 : i32
    scf.if %2 {
      %cst_10 = arith.constant 0.000000e+00 : f32
      %12 = vector.broadcast %cst_10 : f32 to vector<16x192xf32>
      %c0_11 = arith.constant 0 : index
      %c0_12 = arith.constant 0 : index
      %13 = vector.load %arg7[%c0_11, %c0_12] : memref<16x192xf32, #tpu.memory_space<vmem>>, vector<16x192xf32>
      tpu.vector_store %arg7[%c0_11, %c0_12], %12 {strides = array<i32>} : memref<16x192xf32, #tpu.memory_space<vmem>>, vector<16x192xf32>,
    } else {
    }
    %c0 = arith.constant 0 : index
    %c0_1 = arith.constant 0 : index
    %3 = vector.load %arg7[%c0, %c0_1] : memref<16x192xf32, #tpu.memory_space<vmem>>, vector<16x192xf32>
    %c0_2 = arith.constant 0 : index
    %c0_3 = arith.constant 0 : index
    %4 = vector.load %arg3[%c0_2, %c0_3] : memref<16x64xbf16, #tpu.memory_space<vmem>>, vector<16x64xbf16>
    %c0_4 = arith.constant 0 : index
    %c0_5 = arith.constant 0 : index
    %5 = vector.load %arg4[%c0_4, %c0_5] : memref<64x192xbf16, #tpu.memory_space<vmem>>, vector<64x192xbf16>
    %cst = arith.constant dense<0.000000e+00> : vector<16x192xf32>
    %6 = tpu.matmul %4, %5, %cst {dimension_numbers = #tpu.dot_dimension_numbers<[1], [0], [0], [1], [0, 0, 1, 1], [], []>} : vector<16x64xbf16>, vector<64x192xbf16>, vector<16x192xf32> -> vector<16x192xf32>
    %7 = arith.addf %3, %6 : vector<16x192xf32>
    %c0_6 = arith.constant 0 : index
    %c0_7 = arith.constant 0 : index
    %8 = vector.load %arg7[%c0_6, %c0_7] : memref<16x192xf32, #tpu.memory_space<vmem>>, vector<16x192xf32>
    tpu.vector_store %arg7[%c0_6, %c0_7], %7 {strides = array<i32>} : memref<16x192xf32, #tpu.memory_space<vmem>>, vector<16x192xf32>,
    %c0_i32_8 = arith.constant 0 : i32
    %9 = arith.cmpi eq, %arg2, %c0_i32_8 : i32
    %10 = arith.extui %9 : i1 to i32
    %c0_i32_9 = arith.constant 0 : i32
    %11 = arith.cmpi ne, %10, %c0_i32_9 : i32
    scf.if %11 {
      %c0_10 = arith.constant 0 : index
      %c0_11 = arith.constant 0 : index
      %12 = vector.load %arg7[%c0_10, %c0_11] : memref<16x192xf32, #tpu.memory_space<vmem>>, vector<16x192xf32>
      %c0_12 = arith.constant 0 : index
      %c0_13 = arith.constant 0 : index
      %13 = vector.load %arg5[%c0_12, %c0_13] : memref<1x192xbf16, #tpu.memory_space<vmem>>, vector<1x192xbf16>
      %14 = arith.extf %13 : vector<1x192xbf16> to vector<1x192xf32>
      %15 = vector.broadcast %14 : vector<1x192xf32> to vector<16x192xf32>
      %16 = arith.addf %12, %15 : vector<16x192xf32>
      %17 = arith.truncf %16 : vector<16x192xf32> to vector<16x192xbf16>
      %c0_14 = arith.constant 0 : index
      %c0_15 = arith.constant 0 : index
      %18 = vector.load %arg6[%c0_14, %c0_15] : memref<16x192xbf16, #tpu.memory_space<vmem>>, vector<16x192xbf16>
      tpu.vector_store %arg6[%c0_14, %c0_15], %17 {strides = array<i32>} : memref<16x192xbf16, #tpu.memory_space<vmem>>, vector<16x192xbf16>,
    } else {
    }
    return
  }
  func.func @transform_0(%arg0: i32, %arg1: i32, %arg2: i32) -> (i32, i32) {
    %c0_i32 = arith.constant 0 : i32
    return %arg0, %arg2 : i32, i32
  }
  func.func @transform_1(%arg0: i32, %arg1: i32, %arg2: i32) -> (i32, i32) {
    %c0_i32 = arith.constant 0 : i32
    return %arg2, %arg1 : i32, i32
  }
  func.func @transform_2(%arg0: i32, %arg1: i32, %arg2: i32) -> (i32, i32) {
    %c0_i32 = arith.constant 0 : i32
    %c0_i32_0 = arith.constant 0 : i32
    return %c0_i32, %arg1 : i32, i32
  }
  func.func @transform_3(%arg0: i32, %arg1: i32, %arg2: i32) -> (i32, i32) {
    %c0_i32 = arith.constant 0 : i32
    return %arg0, %arg1 : i32, i32
  }
}

module attributes {stable_mosaic.version = 11 : i64} {
  func.func @_attention_kernel(%arg0: i32, %arg1: memref<8x192xbf16, #tpu.memory_space<vmem>>, %arg2: memref<1x1x8xf32, #tpu.memory_space<vmem>>, %arg3: memref<8x64xbf16, #tpu.memory_space<vmem>>) attributes {dimension_semantics = [#tpu.dimension_semantics<parallel>], iteration_bounds = array<i64: 2>, scalar_prefetch = 0 : i64, scratch_operands = 0 : i64, tpu.core_type = #tpu.core_type<tc>, window_params = [{transform_indices = @transform_0, window_bounds = array<i64: 8, 192>}, {transform_indices = @transform_1, window_bounds = array<i64: 1, 1, 8>}, {transform_indices = @transform_2, window_bounds = array<i64: 8, 64>}]} {
    %c0 = arith.constant 0 : index
    %c0_0 = arith.constant 0 : index
    %0 = vector.load %arg1[%c0, %c0_0] : memref<8x192xbf16, #tpu.memory_space<vmem>>, vector<8x192xbf16>
    %1 = arith.extf %0 : vector<8x192xbf16> to vector<8x192xf32>
    %c0_1 = arith.constant 0 : index
    %c0_2 = arith.constant 0 : index
    %c0_3 = arith.constant 0 : index
    %2 = vector.load %arg2[%c0_1, %c0_2, %c0_3] : memref<1x1x8xf32, #tpu.memory_space<vmem>>, vector<1x1x8xf32>
    %3 = vector.shape_cast %2 : vector<1x1x8xf32> to vector<1x8xf32>
    %4 = vector.extract_strided_slice %1 {offsets = [0, 0], sizes = [8, 16], strides = [1, 1]} : vector<8x192xf32> to vector<8x16xf32>
    %5 = vector.extract_strided_slice %1 {offsets = [0, 64], sizes = [8, 16], strides = [1, 1]} : vector<8x192xf32> to vector<8x16xf32>
    %6 = vector.extract_strided_slice %1 {offsets = [0, 128], sizes = [8, 16], strides = [1, 1]} : vector<8x192xf32> to vector<8x16xf32>
    %cst = arith.constant dense<0.000000e+00> : vector<8x8xf32>
    %7 = tpu.matmul %4, %5, %cst {dimension_numbers = #tpu.dot_dimension_numbers<[1], [1], [0], [0], [0, 0, 1, 0], [], []>} : vector<8x16xf32>, vector<8x16xf32>, vector<8x8xf32> -> vector<8x8xf32>
    %cst_4 = arith.constant 2.500000e-01 : f32
    %8 = vector.broadcast %cst_4 : f32 to vector<8x8xf32>
    %9 = arith.mulf %7, %8 : vector<8x8xf32>
    %10 = vector.broadcast %3 : vector<1x8xf32> to vector<8x8xf32>
    %11 = arith.addf %9, %10 : vector<8x8xf32>
    %cst_5 = arith.constant dense<0xFF800000> : vector<8xf32>
    %12 = vector.multi_reduction <maximumf>, %11, %cst_5 [1] : vector<8x8xf32> to vector<8xf32>
    %13 = vector.shape_cast %12 : vector<8xf32> to vector<8x1xf32>
    %14 = vector.broadcast %13 : vector<8x1xf32> to vector<8x8xf32>
    %15 = arith.subf %11, %14 : vector<8x8xf32>
    %16 = math.exp %15 : vector<8x8xf32>
    %cst_6 = arith.constant dense<0.000000e+00> : vector<8xf32>
    %17 = vector.multi_reduction <add>, %16, %cst_6 [1] : vector<8x8xf32> to vector<8xf32>
    %18 = vector.shape_cast %17 : vector<8xf32> to vector<8x1xf32>
    %19 = tpu.reciprocal %18 {approx = true} : vector<8x1xf32> -> vector<8x1xf32>
    %20 = vector.broadcast %19 : vector<8x1xf32> to vector<8x8xf32>
    %21 = arith.mulf %16, %20 : vector<8x8xf32>
    %cst_7 = arith.constant dense<0.000000e+00> : vector<8x16xf32>
    %22 = tpu.matmul %21, %6, %cst_7 {dimension_numbers = #tpu.dot_dimension_numbers<[1], [0], [0], [1], [0, 0, 1, 1], [], []>} : vector<8x8xf32>, vector<8x16xf32>, vector<8x16xf32> -> vector<8x16xf32>
    %23 = vector.extract_strided_slice %1 {offsets = [0, 16], sizes = [8, 16], strides = [1, 1]} : vector<8x192xf32> to vector<8x16xf32>
    %24 = vector.extract_strided_slice %1 {offsets = [0, 80], sizes = [8, 16], strides = [1, 1]} : vector<8x192xf32> to vector<8x16xf32>
    %25 = vector.extract_strided_slice %1 {offsets = [0, 144], sizes = [8, 16], strides = [1, 1]} : vector<8x192xf32> to vector<8x16xf32>
    %cst_8 = arith.constant dense<0.000000e+00> : vector<8x8xf32>
    %26 = tpu.matmul %23, %24, %cst_8 {dimension_numbers = #tpu.dot_dimension_numbers<[1], [1], [0], [0], [0, 0, 1, 0], [], []>} : vector<8x16xf32>, vector<8x16xf32>, vector<8x8xf32> -> vector<8x8xf32>
    %cst_9 = arith.constant 2.500000e-01 : f32
    %27 = vector.broadcast %cst_9 : f32 to vector<8x8xf32>
    %28 = arith.mulf %26, %27 : vector<8x8xf32>
    %29 = vector.broadcast %3 : vector<1x8xf32> to vector<8x8xf32>
    %30 = arith.addf %28, %29 : vector<8x8xf32>
    %cst_10 = arith.constant dense<0xFF800000> : vector<8xf32>
    %31 = vector.multi_reduction <maximumf>, %30, %cst_10 [1] : vector<8x8xf32> to vector<8xf32>
    %32 = vector.shape_cast %31 : vector<8xf32> to vector<8x1xf32>
    %33 = vector.broadcast %32 : vector<8x1xf32> to vector<8x8xf32>
    %34 = arith.subf %30, %33 : vector<8x8xf32>
    %35 = math.exp %34 : vector<8x8xf32>
    %cst_11 = arith.constant dense<0.000000e+00> : vector<8xf32>
    %36 = vector.multi_reduction <add>, %35, %cst_11 [1] : vector<8x8xf32> to vector<8xf32>
    %37 = vector.shape_cast %36 : vector<8xf32> to vector<8x1xf32>
    %38 = tpu.reciprocal %37 {approx = true} : vector<8x1xf32> -> vector<8x1xf32>
    %39 = vector.broadcast %38 : vector<8x1xf32> to vector<8x8xf32>
    %40 = arith.mulf %35, %39 : vector<8x8xf32>
    %cst_12 = arith.constant dense<0.000000e+00> : vector<8x16xf32>
    %41 = tpu.matmul %40, %25, %cst_12 {dimension_numbers = #tpu.dot_dimension_numbers<[1], [0], [0], [1], [0, 0, 1, 1], [], []>} : vector<8x8xf32>, vector<8x16xf32>, vector<8x16xf32> -> vector<8x16xf32>
    %42 = vector.extract_strided_slice %1 {offsets = [0, 32], sizes = [8, 16], strides = [1, 1]} : vector<8x192xf32> to vector<8x16xf32>
    %43 = vector.extract_strided_slice %1 {offsets = [0, 96], sizes = [8, 16], strides = [1, 1]} : vector<8x192xf32> to vector<8x16xf32>
    %44 = vector.extract_strided_slice %1 {offsets = [0, 160], sizes = [8, 16], strides = [1, 1]} : vector<8x192xf32> to vector<8x16xf32>
    %cst_13 = arith.constant dense<0.000000e+00> : vector<8x8xf32>
    %45 = tpu.matmul %42, %43, %cst_13 {dimension_numbers = #tpu.dot_dimension_numbers<[1], [1], [0], [0], [0, 0, 1, 0], [], []>} : vector<8x16xf32>, vector<8x16xf32>, vector<8x8xf32> -> vector<8x8xf32>
    %cst_14 = arith.constant 2.500000e-01 : f32
    %46 = vector.broadcast %cst_14 : f32 to vector<8x8xf32>
    %47 = arith.mulf %45, %46 : vector<8x8xf32>
    %48 = vector.broadcast %3 : vector<1x8xf32> to vector<8x8xf32>
    %49 = arith.addf %47, %48 : vector<8x8xf32>
    %cst_15 = arith.constant dense<0xFF800000> : vector<8xf32>
    %50 = vector.multi_reduction <maximumf>, %49, %cst_15 [1] : vector<8x8xf32> to vector<8xf32>
    %51 = vector.shape_cast %50 : vector<8xf32> to vector<8x1xf32>
    %52 = vector.broadcast %51 : vector<8x1xf32> to vector<8x8xf32>
    %53 = arith.subf %49, %52 : vector<8x8xf32>
    %54 = math.exp %53 : vector<8x8xf32>
    %cst_16 = arith.constant dense<0.000000e+00> : vector<8xf32>
    %55 = vector.multi_reduction <add>, %54, %cst_16 [1] : vector<8x8xf32> to vector<8xf32>
    %56 = vector.shape_cast %55 : vector<8xf32> to vector<8x1xf32>
    %57 = tpu.reciprocal %56 {approx = true} : vector<8x1xf32> -> vector<8x1xf32>
    %58 = vector.broadcast %57 : vector<8x1xf32> to vector<8x8xf32>
    %59 = arith.mulf %54, %58 : vector<8x8xf32>
    %cst_17 = arith.constant dense<0.000000e+00> : vector<8x16xf32>
    %60 = tpu.matmul %59, %44, %cst_17 {dimension_numbers = #tpu.dot_dimension_numbers<[1], [0], [0], [1], [0, 0, 1, 1], [], []>} : vector<8x8xf32>, vector<8x16xf32>, vector<8x16xf32> -> vector<8x16xf32>
    %61 = vector.extract_strided_slice %1 {offsets = [0, 48], sizes = [8, 16], strides = [1, 1]} : vector<8x192xf32> to vector<8x16xf32>
    %62 = vector.extract_strided_slice %1 {offsets = [0, 112], sizes = [8, 16], strides = [1, 1]} : vector<8x192xf32> to vector<8x16xf32>
    %63 = vector.extract_strided_slice %1 {offsets = [0, 176], sizes = [8, 16], strides = [1, 1]} : vector<8x192xf32> to vector<8x16xf32>
    %cst_18 = arith.constant dense<0.000000e+00> : vector<8x8xf32>
    %64 = tpu.matmul %61, %62, %cst_18 {dimension_numbers = #tpu.dot_dimension_numbers<[1], [1], [0], [0], [0, 0, 1, 0], [], []>} : vector<8x16xf32>, vector<8x16xf32>, vector<8x8xf32> -> vector<8x8xf32>
    %cst_19 = arith.constant 2.500000e-01 : f32
    %65 = vector.broadcast %cst_19 : f32 to vector<8x8xf32>
    %66 = arith.mulf %64, %65 : vector<8x8xf32>
    %67 = vector.broadcast %3 : vector<1x8xf32> to vector<8x8xf32>
    %68 = arith.addf %66, %67 : vector<8x8xf32>
    %cst_20 = arith.constant dense<0xFF800000> : vector<8xf32>
    %69 = vector.multi_reduction <maximumf>, %68, %cst_20 [1] : vector<8x8xf32> to vector<8xf32>
    %70 = vector.shape_cast %69 : vector<8xf32> to vector<8x1xf32>
    %71 = vector.broadcast %70 : vector<8x1xf32> to vector<8x8xf32>
    %72 = arith.subf %68, %71 : vector<8x8xf32>
    %73 = math.exp %72 : vector<8x8xf32>
    %cst_21 = arith.constant dense<0.000000e+00> : vector<8xf32>
    %74 = vector.multi_reduction <add>, %73, %cst_21 [1] : vector<8x8xf32> to vector<8xf32>
    %75 = vector.shape_cast %74 : vector<8xf32> to vector<8x1xf32>
    %76 = tpu.reciprocal %75 {approx = true} : vector<8x1xf32> -> vector<8x1xf32>
    %77 = vector.broadcast %76 : vector<8x1xf32> to vector<8x8xf32>
    %78 = arith.mulf %73, %77 : vector<8x8xf32>
    %cst_22 = arith.constant dense<0.000000e+00> : vector<8x16xf32>
    %79 = tpu.matmul %78, %63, %cst_22 {dimension_numbers = #tpu.dot_dimension_numbers<[1], [0], [0], [1], [0, 0, 1, 1], [], []>} : vector<8x8xf32>, vector<8x16xf32>, vector<8x16xf32> -> vector<8x16xf32>
    %80 = tpu.concatenate %22, %41, %60, %79 in 1 : vector<8x16xf32>, vector<8x16xf32>, vector<8x16xf32>, vector<8x16xf32> -> vector<8x64xf32>
    %81 = arith.truncf %80 : vector<8x64xf32> to vector<8x64xbf16>
    %c0_23 = arith.constant 0 : index
    %c0_24 = arith.constant 0 : index
    %82 = vector.load %arg3[%c0_23, %c0_24] : memref<8x64xbf16, #tpu.memory_space<vmem>>, vector<8x64xbf16>
    tpu.vector_store %arg3[%c0_23, %c0_24], %81 {strides = array<i32>} : memref<8x64xbf16, #tpu.memory_space<vmem>>, vector<8x64xbf16>,
    return
  }
  func.func @transform_0(%arg0: i32) -> (i32, i32) {
    %c0_i32 = arith.constant 0 : i32
    %c0_i32_0 = arith.constant 0 : i32
    return %arg0, %c0_i32 : i32, i32
  }
  func.func @transform_1(%arg0: i32) -> (i32, i32, i32) {
    %c0_i32 = arith.constant 0 : i32
    %c0_i32_0 = arith.constant 0 : i32
    %c0_i32_1 = arith.constant 0 : i32
    return %arg0, %c0_i32, %c0_i32_0 : i32, i32, i32
  }
  func.func @transform_2(%arg0: i32) -> (i32, i32) {
    %c0_i32 = arith.constant 0 : i32
    %c0_i32_0 = arith.constant 0 : i32
    return %arg0, %c0_i32 : i32, i32
  }
}

module attributes {stable_mosaic.version = 11 : i64} {
  func.func @_matmul_ln_kernel(%arg0: i32, %arg1: i32, %arg2: memref<16x256xbf16, #tpu.memory_space<vmem>>, %arg3: memref<256x64xbf16, #tpu.memory_space<vmem>>, %arg4: memref<1x64xbf16, #tpu.memory_space<vmem>>, %arg5: memref<16x64xbf16, #tpu.memory_space<vmem>>, %arg6: memref<1x64xbf16, #tpu.memory_space<vmem>>, %arg7: memref<1x64xbf16, #tpu.memory_space<vmem>>, %arg8: memref<16x64xbf16, #tpu.memory_space<vmem>>, %arg9: memref<16x64xf32, #tpu.memory_space<vmem>>) attributes {dimension_semantics = [#tpu.dimension_semantics<parallel>, #tpu.dimension_semantics<arbitrary>], iteration_bounds = array<i64: 1, 1>, scalar_prefetch = 0 : i64, scratch_operands = 1 : i64, tpu.core_type = #tpu.core_type<tc>, window_params = [{transform_indices = @transform_0, window_bounds = array<i64: 16, 256>}, {transform_indices = @transform_1, window_bounds = array<i64: 256, 64>}, {pipeline_mode = #tpu.pipeline_mode<synchronous>, transform_indices = @transform_2, window_bounds = array<i64: 1, 64>}, {transform_indices = @transform_3, window_bounds = array<i64: 16, 64>}, {pipeline_mode = #tpu.pipeline_mode<synchronous>, transform_indices = @transform_4, window_bounds = array<i64: 1, 64>}, {pipeline_mode = #tpu.pipeline_mode<synchronous>, transform_indices = @transform_5, window_bounds = array<i64: 1, 64>}, {transform_indices = @transform_6, window_bounds = array<i64: 16, 64>}]} {
    %c0_i32 = arith.constant 0 : i32
    %0 = arith.cmpi eq, %arg1, %c0_i32 : i32
    %1 = arith.extui %0 : i1 to i32
    %c0_i32_0 = arith.constant 0 : i32
    %2 = arith.cmpi ne, %1, %c0_i32_0 : i32
    scf.if %2 {
      %cst_10 = arith.constant 0.000000e+00 : f32
      %12 = vector.broadcast %cst_10 : f32 to vector<16x64xf32>
      %c0_11 = arith.constant 0 : index
      %c0_12 = arith.constant 0 : index
      %13 = vector.load %arg9[%c0_11, %c0_12] : memref<16x64xf32, #tpu.memory_space<vmem>>, vector<16x64xf32>
      tpu.vector_store %arg9[%c0_11, %c0_12], %12 {strides = array<i32>} : memref<16x64xf32, #tpu.memory_space<vmem>>, vector<16x64xf32>,
    } else {
    }
    %c0 = arith.constant 0 : index
    %c0_1 = arith.constant 0 : index
    %3 = vector.load %arg9[%c0, %c0_1] : memref<16x64xf32, #tpu.memory_space<vmem>>, vector<16x64xf32>
    %c0_2 = arith.constant 0 : index
    %c0_3 = arith.constant 0 : index
    %4 = vector.load %arg2[%c0_2, %c0_3] : memref<16x256xbf16, #tpu.memory_space<vmem>>, vector<16x256xbf16>
    %c0_4 = arith.constant 0 : index
    %c0_5 = arith.constant 0 : index
    %5 = vector.load %arg3[%c0_4, %c0_5] : memref<256x64xbf16, #tpu.memory_space<vmem>>, vector<256x64xbf16>
    %cst = arith.constant dense<0.000000e+00> : vector<16x64xf32>
    %6 = tpu.matmul %4, %5, %cst {dimension_numbers = #tpu.dot_dimension_numbers<[1], [0], [0], [1], [0, 0, 1, 1], [], []>} : vector<16x256xbf16>, vector<256x64xbf16>, vector<16x64xf32> -> vector<16x64xf32>
    %7 = arith.addf %3, %6 : vector<16x64xf32>
    %c0_6 = arith.constant 0 : index
    %c0_7 = arith.constant 0 : index
    %8 = vector.load %arg9[%c0_6, %c0_7] : memref<16x64xf32, #tpu.memory_space<vmem>>, vector<16x64xf32>
    tpu.vector_store %arg9[%c0_6, %c0_7], %7 {strides = array<i32>} : memref<16x64xf32, #tpu.memory_space<vmem>>, vector<16x64xf32>,
    %c0_i32_8 = arith.constant 0 : i32
    %9 = arith.cmpi eq, %arg1, %c0_i32_8 : i32
    %10 = arith.extui %9 : i1 to i32
    %c0_i32_9 = arith.constant 0 : i32
    %11 = arith.cmpi ne, %10, %c0_i32_9 : i32
    scf.if %11 {
      %c0_10 = arith.constant 0 : index
      %c0_11 = arith.constant 0 : index
      %12 = vector.load %arg9[%c0_10, %c0_11] : memref<16x64xf32, #tpu.memory_space<vmem>>, vector<16x64xf32>
      %c0_12 = arith.constant 0 : index
      %c0_13 = arith.constant 0 : index
      %13 = vector.load %arg4[%c0_12, %c0_13] : memref<1x64xbf16, #tpu.memory_space<vmem>>, vector<1x64xbf16>
      %14 = arith.extf %13 : vector<1x64xbf16> to vector<1x64xf32>
      %15 = vector.broadcast %14 : vector<1x64xf32> to vector<16x64xf32>
      %16 = arith.addf %12, %15 : vector<16x64xf32>
      %c0_14 = arith.constant 0 : index
      %c0_15 = arith.constant 0 : index
      %17 = vector.load %arg5[%c0_14, %c0_15] : memref<16x64xbf16, #tpu.memory_space<vmem>>, vector<16x64xbf16>
      %18 = arith.extf %17 : vector<16x64xbf16> to vector<16x64xf32>
      %19 = arith.addf %16, %18 : vector<16x64xf32>
      %cst_16 = arith.constant dense<0.000000e+00> : vector<16xf32>
      %20 = vector.multi_reduction <add>, %19, %cst_16 [1] : vector<16x64xf32> to vector<16xf32>
      %21 = vector.shape_cast %20 : vector<16xf32> to vector<16x1xf32>
      %cst_17 = arith.constant 6.400000e+01 : f32
      %22 = vector.broadcast %cst_17 : f32 to vector<16x1xf32>
      %23 = arith.divf %21, %22 : vector<16x1xf32>
      %24 = vector.broadcast %23 : vector<16x1xf32> to vector<16x64xf32>
      %25 = arith.subf %19, %24 : vector<16x64xf32>
      %26 = vector.broadcast %23 : vector<16x1xf32> to vector<16x64xf32>
      %27 = arith.subf %19, %26 : vector<16x64xf32>
      %28 = arith.mulf %25, %27 : vector<16x64xf32>
      %cst_18 = arith.constant dense<0.000000e+00> : vector<16xf32>
      %29 = vector.multi_reduction <add>, %28, %cst_18 [1] : vector<16x64xf32> to vector<16xf32>
      %30 = vector.shape_cast %29 : vector<16xf32> to vector<16x1xf32>
      %cst_19 = arith.constant 6.400000e+01 : f32
      %31 = vector.broadcast %cst_19 : f32 to vector<16x1xf32>
      %32 = arith.divf %30, %31 : vector<16x1xf32>
      %33 = vector.broadcast %23 : vector<16x1xf32> to vector<16x64xf32>
      %34 = arith.subf %19, %33 : vector<16x64xf32>
      %cst_20 = arith.constant 9.99999974E-6 : f32
      %35 = vector.broadcast %cst_20 : f32 to vector<16x1xf32>
      %36 = arith.addf %32, %35 : vector<16x1xf32>
      %37 = math.rsqrt %36 : vector<16x1xf32>
      %38 = vector.broadcast %37 : vector<16x1xf32> to vector<16x64xf32>
      %39 = arith.mulf %34, %38 : vector<16x64xf32>
      %c0_21 = arith.constant 0 : index
      %c0_22 = arith.constant 0 : index
      %40 = vector.load %arg6[%c0_21, %c0_22] : memref<1x64xbf16, #tpu.memory_space<vmem>>, vector<1x64xbf16>
      %41 = arith.extf %40 : vector<1x64xbf16> to vector<1x64xf32>
      %42 = vector.broadcast %41 : vector<1x64xf32> to vector<16x64xf32>
      %43 = arith.mulf %39, %42 : vector<16x64xf32>
      %c0_23 = arith.constant 0 : index
      %c0_24 = arith.constant 0 : index
      %44 = vector.load %arg7[%c0_23, %c0_24] : memref<1x64xbf16, #tpu.memory_space<vmem>>, vector<1x64xbf16>
      %45 = arith.extf %44 : vector<1x64xbf16> to vector<1x64xf32>
      %46 = vector.broadcast %45 : vector<1x64xf32> to vector<16x64xf32>
      %47 = arith.addf %43, %46 : vector<16x64xf32>
      %48 = arith.truncf %47 : vector<16x64xf32> to vector<16x64xbf16>
      %c0_25 = arith.constant 0 : index
      %c0_26 = arith.constant 0 : index
      %49 = vector.load %arg8[%c0_25, %c0_26] : memref<16x64xbf16, #tpu.memory_space<vmem>>, vector<16x64xbf16>
      tpu.vector_store %arg8[%c0_25, %c0_26], %48 {strides = array<i32>} : memref<16x64xbf16, #tpu.memory_space<vmem>>, vector<16x64xbf16>,
    } else {
    }
    return
  }
  func.func @transform_0(%arg0: i32, %arg1: i32) -> (i32, i32) {
    %c0_i32 = arith.constant 0 : i32
    return %arg0, %arg1 : i32, i32
  }
  func.func @transform_1(%arg0: i32, %arg1: i32) -> (i32, i32) {
    %c0_i32 = arith.constant 0 : i32
    %c0_i32_0 = arith.constant 0 : i32
    return %arg1, %c0_i32 : i32, i32
  }
  func.func @transform_2(%arg0: i32, %arg1: i32) -> (i32, i32) {
    %c0_i32 = arith.constant 0 : i32
    %c0_i32_0 = arith.constant 0 : i32
    %c0_i32_1 = arith.constant 0 : i32
    return %c0_i32, %c0_i32_0 : i32, i32
  }
  func.func @transform_3(%arg0: i32, %arg1: i32) -> (i32, i32) {
    %c0_i32 = arith.constant 0 : i32
    %c0_i32_0 = arith.constant 0 : i32
    return %arg0, %c0_i32 : i32, i32
  }
  func.func @transform_4(%arg0: i32, %arg1: i32) -> (i32, i32) {
    %c0_i32 = arith.constant 0 : i32
    %c0_i32_0 = arith.constant 0 : i32
    %c0_i32_1 = arith.constant 0 : i32
    return %c0_i32, %c0_i32_0 : i32, i32
  }
  func.func @transform_5(%arg0: i32, %arg1: i32) -> (i32, i32) {
    %c0_i32 = arith.constant 0 : i32
    %c0_i32_0 = arith.constant 0 : i32
    %c0_i32_1 = arith.constant 0 : i32
    return %c0_i32, %c0_i32_0 : i32, i32
  }
  func.func @transform_6(%arg0: i32, %arg1: i32) -> (i32, i32) {
    %c0_i32 = arith.constant 0 : i32
    %c0_i32_0 = arith.constant 0 : i32
    return %arg0, %c0_i32 : i32, i32
  }
}

module attributes {stable_mosaic.version = 11 : i64} {
  func.func @_matmul_kernel(%arg0: i32, %arg1: i32, %arg2: i32, %arg3: memref<16x64xbf16, #tpu.memory_space<vmem>>, %arg4: memref<64x256xbf16, #tpu.memory_space<vmem>>, %arg5: memref<1x256xbf16, #tpu.memory_space<vmem>>, %arg6: memref<16x256xbf16, #tpu.memory_space<vmem>>, %arg7: memref<16x256xf32, #tpu.memory_space<vmem>>) attributes {dimension_semantics = [#tpu.dimension_semantics<parallel>, #tpu.dimension_semantics<parallel>, #tpu.dimension_semantics<arbitrary>], iteration_bounds = array<i64: 1, 1, 1>, scalar_prefetch = 0 : i64, scratch_operands = 1 : i64, tpu.core_type = #tpu.core_type<tc>, window_params = [{transform_indices = @transform_0, window_bounds = array<i64: 16, 64>}, {transform_indices = @transform_1, window_bounds = array<i64: 64, 256>}, {transform_indices = @transform_2, window_bounds = array<i64: 1, 256>}, {transform_indices = @transform_3, window_bounds = array<i64: 16, 256>}]} {
    %c0_i32 = arith.constant 0 : i32
    %0 = arith.cmpi eq, %arg2, %c0_i32 : i32
    %1 = arith.extui %0 : i1 to i32
    %c0_i32_0 = arith.constant 0 : i32
    %2 = arith.cmpi ne, %1, %c0_i32_0 : i32
    scf.if %2 {
      %cst_10 = arith.constant 0.000000e+00 : f32
      %12 = vector.broadcast %cst_10 : f32 to vector<16x256xf32>
      %c0_11 = arith.constant 0 : index
      %c0_12 = arith.constant 0 : index
      %13 = vector.load %arg7[%c0_11, %c0_12] : memref<16x256xf32, #tpu.memory_space<vmem>>, vector<16x256xf32>
      tpu.vector_store %arg7[%c0_11, %c0_12], %12 {strides = array<i32>} : memref<16x256xf32, #tpu.memory_space<vmem>>, vector<16x256xf32>,
    } else {
    }
    %c0 = arith.constant 0 : index
    %c0_1 = arith.constant 0 : index
    %3 = vector.load %arg7[%c0, %c0_1] : memref<16x256xf32, #tpu.memory_space<vmem>>, vector<16x256xf32>
    %c0_2 = arith.constant 0 : index
    %c0_3 = arith.constant 0 : index
    %4 = vector.load %arg3[%c0_2, %c0_3] : memref<16x64xbf16, #tpu.memory_space<vmem>>, vector<16x64xbf16>
    %c0_4 = arith.constant 0 : index
    %c0_5 = arith.constant 0 : index
    %5 = vector.load %arg4[%c0_4, %c0_5] : memref<64x256xbf16, #tpu.memory_space<vmem>>, vector<64x256xbf16>
    %cst = arith.constant dense<0.000000e+00> : vector<16x256xf32>
    %6 = tpu.matmul %4, %5, %cst {dimension_numbers = #tpu.dot_dimension_numbers<[1], [0], [0], [1], [0, 0, 1, 1], [], []>} : vector<16x64xbf16>, vector<64x256xbf16>, vector<16x256xf32> -> vector<16x256xf32>
    %7 = arith.addf %3, %6 : vector<16x256xf32>
    %c0_6 = arith.constant 0 : index
    %c0_7 = arith.constant 0 : index
    %8 = vector.load %arg7[%c0_6, %c0_7] : memref<16x256xf32, #tpu.memory_space<vmem>>, vector<16x256xf32>
    tpu.vector_store %arg7[%c0_6, %c0_7], %7 {strides = array<i32>} : memref<16x256xf32, #tpu.memory_space<vmem>>, vector<16x256xf32>,
    %c0_i32_8 = arith.constant 0 : i32
    %9 = arith.cmpi eq, %arg2, %c0_i32_8 : i32
    %10 = arith.extui %9 : i1 to i32
    %c0_i32_9 = arith.constant 0 : i32
    %11 = arith.cmpi ne, %10, %c0_i32_9 : i32
    scf.if %11 {
      %c0_10 = arith.constant 0 : index
      %c0_11 = arith.constant 0 : index
      %12 = vector.load %arg7[%c0_10, %c0_11] : memref<16x256xf32, #tpu.memory_space<vmem>>, vector<16x256xf32>
      %c0_12 = arith.constant 0 : index
      %c0_13 = arith.constant 0 : index
      %13 = vector.load %arg5[%c0_12, %c0_13] : memref<1x256xbf16, #tpu.memory_space<vmem>>, vector<1x256xbf16>
      %14 = arith.extf %13 : vector<1x256xbf16> to vector<1x256xf32>
      %15 = vector.broadcast %14 : vector<1x256xf32> to vector<16x256xf32>
      %16 = arith.addf %12, %15 : vector<16x256xf32>
      %17 = arith.mulf %16, %16 : vector<16x256xf32>
      %18 = arith.mulf %16, %17 : vector<16x256xf32>
      %cst_14 = arith.constant 4.471500e-02 : f32
      %19 = vector.broadcast %cst_14 : f32 to vector<16x256xf32>
      %20 = arith.mulf %19, %18 : vector<16x256xf32>
      %21 = arith.addf %16, %20 : vector<16x256xf32>
      %cst_15 = arith.constant 0.797884583 : f32
      %22 = vector.broadcast %cst_15 : f32 to vector<16x256xf32>
      %23 = arith.mulf %22, %21 : vector<16x256xf32>
      %24 = math.tanh %23 : vector<16x256xf32>
      %cst_16 = arith.constant 1.000000e+00 : f32
      %25 = vector.broadcast %cst_16 : f32 to vector<16x256xf32>
      %26 = arith.addf %25, %24 : vector<16x256xf32>
      %cst_17 = arith.constant 5.000000e-01 : f32
      %27 = vector.broadcast %cst_17 : f32 to vector<16x256xf32>
      %28 = arith.mulf %27, %26 : vector<16x256xf32>
      %29 = arith.mulf %16, %28 : vector<16x256xf32>
      %30 = arith.truncf %29 : vector<16x256xf32> to vector<16x256xbf16>
      %c0_18 = arith.constant 0 : index
      %c0_19 = arith.constant 0 : index
      %31 = vector.load %arg6[%c0_18, %c0_19] : memref<16x256xbf16, #tpu.memory_space<vmem>>, vector<16x256xbf16>
      tpu.vector_store %arg6[%c0_18, %c0_19], %30 {strides = array<i32>} : memref<16x256xbf16, #tpu.memory_space<vmem>>, vector<16x256xbf16>,
    } else {
    }
    return
  }
  func.func @transform_0(%arg0: i32, %arg1: i32, %arg2: i32) -> (i32, i32) {
    %c0_i32 = arith.constant 0 : i32
    return %arg0, %arg2 : i32, i32
  }
  func.func @transform_1(%arg0: i32, %arg1: i32, %arg2: i32) -> (i32, i32) {
    %c0_i32 = arith.constant 0 : i32
    return %arg2, %arg1 : i32, i32
  }
  func.func @transform_2(%arg0: i32, %arg1: i32, %arg2: i32) -> (i32, i32) {
    %c0_i32 = arith.constant 0 : i32
    %c0_i32_0 = arith.constant 0 : i32
    return %c0_i32, %arg1 : i32, i32
  }
  func.func @transform_3(%arg0: i32, %arg1: i32, %arg2: i32) -> (i32, i32) {
    %c0_i32 = arith.constant 0 : i32
    return %arg0, %arg1 : i32, i32
  }
}

</mosaic_0001>

<bundles_post_ra>
// kernel: albert_forward.19
= control target key start
LH: loop header
LB: loop body
LE: loop exit
PB: predicated region body
PF: predicated region fallthrough
CT: control target
= control target key end

     0   :  { %11 = vsyncpa [#allocation4], 0  ;;  %s664_s0 = inlined_call_operand.hbm [shape: bf16[16,64], index: 0, kind: input, shape index: {}]   ;;  %s665_s1 = inlined_call_operand.hbm [shape: bf16[64,64], index: 1, kind: input, shape index: {}]   ;;  %s666_s2 = inlined_call_operand.hbm [shape: bf16[1,64], index: 2, kind: input, shape index: {}]   ;;  %s667_s3 = inlined_call_operand.hbm [shape: bf16[16,64], index: 3, kind: input, shape index: {}]   ;;  %s668_s4 = inlined_call_operand.hbm [shape: bf16[1,64], index: 4, kind: input, shape index: {}]   ;;  %s669_s5 = inlined_call_operand.hbm [shape: bf16[1,64], index: 5, kind: input, shape index: {}]   ;;  %s670_s6 = inlined_call_operand.hbm [shape: bf16[16,64], index: 6, kind: output, shape index: {}]  }
   0x1   :  { %12 = vsyncpa [#allocation7], 0 }
   0x2   :  { %13 = vsyncpa [#allocation10], 0 }
   0x3   :  { %14 = vsyncpa [#allocation13], 0 }
   0x4   :  { %15 = vsyncpa [#allocation5], 0  ;;  %s506_s21 = smov [#allocation6]   ;;  %s507_s23 = smov [#allocation9]  }
   0x5   :  { %s33_s22 = sshll.u32 %s506_s21, 4  ;;  %s55_s24 = sshll.u32 %s507_s23, 4  ;;  %s34_s22 = int_to_ptr.vmem [resolvable:$true] %s33_s22  ;;  %s552_s24 = int_to_ptr.vmem [resolvable:$true] %s55_s24 }
   0x6   :  { %s342_s27 = scalar_lea.hbm %s665_s1, 512 }
   0x7   :  { %p343_p0 = scmp.ne.s32.totalorder %s665_s1, %s342_s27  ;;  %p346_p1 = scmp.lt.u32.totalorder %s342_s27, %s665_s1 }
   0x9   :  { %p348_p2 = pnand %p346_p1, %p343_p0 }
   0xb   :  { %351 = shalt.err (!%p348_p2)
}
   0xc   :  { %s352_s8 = scalar_lea.vmem %s34_s22, 512  ;;  %p357_p4 = scmp.lt.s32.totalorder %s34_s22, %s34_s22 }
   0xd   :  { %p353_p3 = scmp.ne.s32.totalorder %s34_s22, %s352_s8  ;;  %p358_p5 = scmp.lt.s32.totalorder %s352_s8, %s352_s8 }
   0xf   :  { %p359_p6 = por %p358_p5, %p357_p4 }
  0x11   :  { %p360_p7 = pnand %p359_p6, %p353_p3 }
  0x13   :  { %363 = shalt.err (!%p360_p7)
}
  0x14   :  { %s508_s9 = smov 64   ;;  %s509_s10 = smov 4  }
  0x15   :  { %39 = dma.hbm_to_vmem [thread:$0]  %s665_s1, 512, %s34_s22, [#allocation7], %s508_s9, %s508_s9, %s509_s10  }
  0x16   :  { %s364_s15 = scalar_lea.hbm %s667_s3, 128 }
  0x17   :  { %p365_p8 = scmp.ne.s32.totalorder %s667_s3, %s364_s15  ;;  %p368_p9 = scmp.lt.u32.totalorder %s364_s15, %s667_s3 }
  0x19   :  { %p370_p10 = pnand %p368_p9, %p365_p8 }
  0x1b   :  { %373 = shalt.err (!%p370_p10)
}
  0x1c   :  { %s374_s20 = scalar_lea.vmem %s552_s24, 128  ;;  %p379_p12 = scmp.lt.s32.totalorder %s552_s24, %s552_s24 }
  0x1d   :  { %p375_p11 = scmp.ne.s32.totalorder %s552_s24, %s374_s20  ;;  %p380_p13 = scmp.lt.s32.totalorder %s374_s20, %s374_s20 }
  0x1f   :  { %p381_p0 = por %p380_p13, %p379_p12 }
  0x21   :  { %p382_p1 = pnand %p381_p0, %p375_p11 }
  0x23   :  { %385 = shalt.err (!%p382_p1)
}
  0x24   :  { %61 = dma.hbm_to_vmem [thread:$0]  %s667_s3, 128, %s552_s24, [#allocation10], %s508_s9, %s508_s9, %s509_s10  }
  0x25   :  { %s510_s22 = smov [#allocation3]   ;;  %s511_s25 = smov [#allocation8]  }
  0x26   :  { %s21_s23 = sshll.u32 %s510_s22, 4  ;;  %s46_s26 = sshll.u32 %s511_s25, 4  ;;  %s22_s23 = int_to_ptr.vmem [resolvable:$true] %s21_s23  ;;  %s47_s26 = int_to_ptr.vmem [resolvable:$true] %s46_s26 }
  0x27   :  { %s386_s29 = scalar_lea.hbm %s664_s0, 128 }
  0x28   :  { %p387_p2 = scmp.ne.s32.totalorder %s664_s0, %s386_s29  ;;  %p390_p3 = scmp.lt.u32.totalorder %s386_s29, %s664_s0 }
  0x2a   :  { %p392_p4 = pnand %p390_p3, %p387_p2 }
  0x2c   :  { %395 = shalt.err (!%p392_p4)
}
  0x2d   :  { %s396_s3 = scalar_lea.vmem %s22_s23, 128  ;;  %p401_p6 = scmp.lt.s32.totalorder %s22_s23, %s22_s23 }
  0x2e   :  { %p397_p5 = scmp.ne.s32.totalorder %s22_s23, %s396_s3  ;;  %p402_p7 = scmp.lt.s32.totalorder %s396_s3, %s396_s3 }
  0x30   :  { %p403_p8 = por %p402_p7, %p401_p6 }
  0x32   :  { %p404_p9 = pnand %p403_p8, %p397_p5 }
  0x34   :  { %407 = shalt.err (!%p404_p9)
}
  0x35   :  { %27 = dma.hbm_to_vmem [thread:$0]  %s664_s0, 128, %s22_s23, [#allocation4], %s508_s9, %s508_s9, %s509_s10  }
  0x36   :  { %s408_s15 = scalar_lea.hbm %s666_s2, 16 }
  0x37   :  { %p409_p10 = scmp.ne.s32.totalorder %s666_s2, %s408_s15  ;;  %p412_p11 = scmp.lt.u32.totalorder %s408_s15, %s666_s2 }
  0x39   :  { %p414_p12 = pnand %p412_p11, %p409_p10 }
  0x3b   :  { %417 = shalt.err (!%p414_p12)
}
  0x3c   :  { %s418_s20 = scalar_lea.vmem %s47_s26, 16  ;;  %s422_s1 = scalar_lea.vmem %s47_s26, 32 }
  0x3d   :  { %p419_p13 = scmp.ne.s32.totalorder %s47_s26, %s418_s20  ;;  %p423_p0 = scmp.lt.s32.totalorder %s47_s26, %s47_s26 }
  0x3e   :  { %p424_p1 = scmp.lt.s32.totalorder %s422_s1, %s418_s20 }
  0x40   :  { %p425_p2 = por %p424_p1, %p423_p0 }
  0x42   :  { %p426_p3 = pnand %p425_p2, %p419_p13 }
  0x44   :  { %429 = shalt.err (!%p426_p3)
}
  0x45   :  { %49 = dma.hbm_to_vmem [thread:$0]  %s666_s2, 16, %s47_s26, [#allocation7]  }
  0x46   :  { %s512_s22 = smov [#allocation11]   ;;  %s513_s25 = smov [#allocation12]  }
  0x47   :  { %s68_s23 = sshll.u32 %s512_s22, 4  ;;  %s78_s27 = sshll.u32 %s513_s25, 4  ;;  %s69_s23 = int_to_ptr.vmem [resolvable:$true] %s68_s23  ;;  %s79_s27 = int_to_ptr.vmem [resolvable:$true] %s78_s27 }
  0x48   :  { %s430_s30 = scalar_lea.hbm %s668_s4, 16 }
  0x49   :  { %p431_p4 = scmp.ne.s32.totalorder %s668_s4, %s430_s30  ;;  %p434_p5 = scmp.lt.u32.totalorder %s430_s30, %s668_s4 }
  0x4b   :  { %p436_p6 = pnand %p434_p5, %p431_p4 }
  0x4d   :  { %439 = shalt.err (!%p436_p6)
}
  0x4e   :  { %s440_s2 = scalar_lea.vmem %s69_s23, 16  ;;  %s444_s26 = scalar_lea.vmem %s69_s23, 32 }
  0x4f   :  { %p441_p7 = scmp.ne.s32.totalorder %s69_s23, %s440_s2  ;;  %p445_p8 = scmp.lt.s32.totalorder %s69_s23, %s69_s23 }
  0x50   :  { %p446_p9 = scmp.lt.s32.totalorder %s444_s26, %s440_s2 }
  0x52   :  { %p447_p10 = por %p446_p9, %p445_p8 }
  0x54   :  { %p448_p11 = pnand %p447_p10, %p441_p7 }
  0x56   :  { %451 = shalt.err (!%p448_p11)
}
  0x57   :  { %71 = dma.hbm_to_vmem [thread:$0]  %s668_s4, 16, %s69_s23, [#allocation10]  }
  0x58   :  { %s452_s15 = scalar_lea.hbm %s669_s5, 16 }
  0x59   :  { %p453_p12 = scmp.ne.s32.totalorder %s669_s5, %s452_s15  ;;  %p456_p13 = scmp.lt.u32.totalorder %s452_s15, %s669_s5 }
  0x5b   :  { %p458_p0 = pnand %p456_p13, %p453_p12 }
  0x5d   :  { %461 = shalt.err (!%p458_p0)
}
  0x5e   :  { %s462_s20 = scalar_lea.vmem %s79_s27, 16  ;;  %s466_s1 = scalar_lea.vmem %s79_s27, 32 }
  0x5f   :  { %p463_p1 = scmp.ne.s32.totalorder %s79_s27, %s462_s20  ;;  %p467_p2 = scmp.lt.s32.totalorder %s79_s27, %s79_s27 }
  0x60   :  { %p468_p3 = scmp.lt.s32.totalorder %s466_s1, %s462_s20 }
  0x62   :  { %p469_p4 = por %p468_p3, %p467_p2 }
  0x64   :  { %p470_p5 = pnand %p469_p4, %p463_p1 }
  0x66   :  { %473 = shalt.err (!%p470_p5)
}
  0x67   :  { %81 = dma.hbm_to_vmem [thread:$0]  %s669_s5, 16, %s79_s27, [#allocation13]  }
  0x68   :  { %496 = dma.done.wait [#allocation4], 128  }
  0x69   :  { %497 = vsyncadd [#allocation4], 4294967168 }
  0x6a   :  { %498 = dma.done.wait [#allocation7], 528  }
  0x6b   :  { %499 = vsyncadd [#allocation7], 4294966768 }
  0x6c   :  { %500 = dma.done.wait [#allocation10], 144  }
  0x6d   :  { %501 = vsyncadd [#allocation10], 4294967152 }
  0x6e   :  { %502 = dma.done.wait [#allocation13], 16  }
  0x6f   :  { %503 = vsyncadd [#allocation13], 4294967280  ;;  %vm105_vm0 = vcmask 523264   ;;  %v514_v0 = vmov 0.0   ;;  %vm515_vm1 = vmmov 0   ;;  %v333_v1 = vld [vmem:[#allocation6] sm:$0xff]   ;;  %v205_v6 = vlaneseq }
  0x70   :  { %310 = vmatprep.subr.bf16.mxu0 %v514_v0  ;;  %318 = vmatprep.mubr.msk.bf16.mxu0 %vm515_vm1, %v514_v0  ;;  %106 = vst.msk [vmem:[#allocation2] sm:$0xff] %vm105_vm0, %v514_v0  ;;  %107 = vst.msk [vmem:[#allocation2 + $0x8] sm:$0xff] %vm105_vm0, %v514_v0  ;;  %v334_v2 = vld [vmem:[#allocation6 + $0x8] sm:$0xff]   ;;  %v335_v3 = vld [vmem:[#allocation6 + $0x10] sm:$0xff]   ;;  %vm268_vm2 = vcmask 519168   ;;  %s516_s5 = smov [#allocation14]  }
  0x71   :  { %311 = vmatpush3.bf16.msra.mxu0 %v333_v1  ;;  %v336_v4 = vld [vmem:[#allocation6 + $0x18] sm:$0xff]   ;;  %v206_v8 = vshrl.u32 %v205_v6, 7  ;;  %v203_v11 = vld [vmem:[#allocation8] sm:$0x1]  ;;  %v302_v19 = vld [vmem:[#allocation9] sm:$0xff]   ;;  %s276_s21 = sshll.u32 %s516_s5, 4  ;;  %s277_s21 = int_to_ptr.vmem [resolvable:$true] %s276_s21 }
  0x72   :  { %312 = vmatprep.subr.bf16.mxu0 %v514_v0  ;;  %v337_v5 = vld [vmem:[#allocation3] sm:$0xff]   ;;  %v204_v17 = vunpack.c.l.bf16 %v203_v11  ;;  %v303_v21 = vunpack.c.l.bf16 %v302_v19  ;;  %v304_v24 = vunpack.c.h.bf16 %v302_v19  ;;  %v244_v47 = vld [vmem:[#allocation11] sm:$0x1]  ;;  %v252_v48 = vld [vmem:[#allocation12] sm:$0x1]  ;;  %s474_s22 = scalar_lea.vmem %s277_s21, 128  ;;  %p479_p7 = scmp.lt.s32.totalorder %s277_s21, %s277_s21 }
  0x73   :  { %v207_v18 = vsub.s32 0, %v206_v8  ;;  %v245_v49 = vunpack.c.l.bf16 %v244_v47  ;;  %v253_v50 = vunpack.c.l.bf16 %v252_v48  ;;  %p475_p6 = scmp.ne.s32.totalorder %s277_s21, %s474_s22  ;;  %p480_p8 = scmp.lt.s32.totalorder %s474_s22, %s474_s22 }
  0x75   :  { %313 = vmatpush3.bf16.msra.mxu0 %v334_v2  ;;  %v208_v20 = vrot.slane %v204_v17, %v207_v18  ;;  %v249_v51 = vrot.slane %v245_v49, %v207_v18  ;;  %v257_v54 = vrot.slane %v253_v50, %v207_v18  ;;  %p481_p9 = por %p480_p8, %p479_p7 }
  0x76   :  { %314 = vmatprep.subr.bf16.mxu0 %v514_v0 }
  0x77   :  { %v108_v7 = vld [vmem:[#allocation2] sm:$0xff]  ;;  %v109_v10 = vld [vmem:[#allocation2 + $0x8] sm:$0xff]  ;;  %p482_p10 = pnand %p481_p9, %p475_p6 }
  0x79   :  { %315 = vmatpush3.bf16.msra.mxu0 %v335_v3 }
  0x7a   :  { %316 = vmatprep.subr.bf16.mxu0 %v514_v0 }
  0x7d   :  { %317 = vmatpush3.bf16.msra.mxu0 %v336_v4 }
  0x80   :  { %319 = vmatmul.mubr.msk.bf16.vlgmr.msra.gmra.mrb[0].mxu0 %vm105_vm0, %v337_v5 }
 0x153   :  { %v187_v9 = vpop.f32.mrb[0].mxu0 }
 0x154   :  { %v194_v12 = vadd.f32 %v187_v9, %v108_v7  ;;  %v320_v13 = vpop.f32.mrb[1].mxu0 }
 0x155   :  { %v190_v14 = vpop.f32.mrb[2].mxu0 }
 0x156   :  { %196 = vst.msk [vmem:[#allocation2] sm:$0xff] %vm105_vm0, %v194_v12  ;;  %v195_v15 = vadd.f32 %v190_v14, %v109_v10  ;;  %v321_v16 = vpop.f32.mrb[3].mxu0 }
 0x158   :  { %197 = vst.msk [vmem:[#allocation2 + $0x8] sm:$0xff] %vm105_vm0, %v195_v15 }
 0x15d   :  { %v201_v22 = vld [vmem:[#allocation2] sm:$0xff] }
 0x15e   :  { %v209_v23 = vadd.f32 %v208_v20, %v201_v22 }
 0x15f   :  { %v202_v25 = vld [vmem:[#allocation2 + $0x8] sm:$0xff] }
 0x160   :  { %v215_v26 = vadd.f32 %v303_v21, %v209_v23  ;;  %v210_v27 = vadd.f32 %v208_v20, %v202_v25 }
 0x162   :  { %v217_v28 = vsel %vm105_vm0, %v215_v26, 0.0  ;;  %v216_v29 = vadd.f32 %v304_v24, %v210_v27 }
 0x163   :  { %218 = vadd.xlane.f32.xlu0 %v217_v28 }
 0x164   :  { %v220_v30 = vsel %vm105_vm0, %v216_v29, 0.0 }
 0x167   :  { %221 = vadd.xlane.f32.xlu0 %v220_v30 }
 0x1f0   :  { %v219_v31 = vpop.xlane.xlu0 %218 }
 0x1f1   :  { %v224_v32 = vmul.f32 0.015625, %v219_v31 }
 0x1f3   :  { %v226_v33 = vsub.f32 %v215_v26, %v224_v32 }
 0x1f4   :  { %v222_v34 = vpop.xlane.xlu0 %221 }
 0x1f5   :  { %v225_v35 = vmul.f32 0.015625, %v222_v34  ;;  %v228_v36 = vmul.f32 %v226_v33, %v226_v33 }
 0x1f7   :  { %v227_v37 = vsub.f32 %v216_v29, %v225_v35  ;;  %v230_v38 = vsel %vm105_vm0, %v228_v36, 0.0 }
 0x1f8   :  { %231 = vadd.xlane.f32.xlu1 %v230_v38 }
 0x1f9   :  { %v229_v39 = vmul.f32 %v227_v37, %v227_v37 }
 0x1fb   :  { %v233_v40 = vsel %vm105_vm0, %v229_v39, 0.0 }
 0x1fc   :  { %234 = vadd.xlane.f32.xlu1 %v233_v40 }
 0x285   :  { %v232_v41 = vpop.xlane.xlu1 %231 }
 0x286   :  { %v236_v42 = vmul.f32 0.015625, %v232_v41 }
 0x288   :  { %v238_v43 = vadd.f32 1e-05, %v236_v42 }
 0x289   :  { %v235_v44 = vpop.xlane.xlu1 %234 }
 0x28a   :  { %338 = vrsqrt.f32 %v238_v43  ;;  %v237_v45 = vmul.f32 0.015625, %v235_v44 }
 0x28c   :  { %v239_v46 = vadd.f32 1e-05, %v237_v45 }
 0x28e   :  { %340 = vrsqrt.f32 %v239_v46 }
 0x294   :  { %v339_v52 = vpop.eup %338 }
 0x295   :  { %v242_v53 = vmul.f32 %v339_v52, %v226_v33 }
 0x297   :  { %v250_v55 = vmul.f32 %v249_v51, %v242_v53 }
 0x298   :  { %v341_v56 = vpop.eup %340 }
 0x299   :  { %v243_v57 = vmul.f32 %v341_v56, %v227_v37  ;;  %v258_v58 = vadd.f32 %v257_v54, %v250_v55 }
 0x29b   :  { %v251_v59 = vmul.f32 %v249_v51, %v243_v57  ;;  %v299_v60 = vpack.c.bf16 %v258_v58, %v258_v58 }
 0x29d   :  { %v259_v61 = vadd.f32 %v257_v54, %v251_v59  ;;  %269 = vst.msk [vmem:[#allocation14] sm:$0xf] %vm268_vm2, %v299_v60 }
 0x29f   :  { %v300_v62 = vpack.c.bf16 %v259_v61, %v259_v61 }
 0x2a1   :  { %270 = vst.msk [vmem:[#allocation14 + $0x4] sm:$0xf] %vm268_vm2, %v300_v62 }
 0x2a2   :  { %485 = shalt.err (!%p482_p10)
}
 0x2a3   :  { %s486_s27 = scalar_lea.hbm %s670_s6, 128 }
 0x2a4   :  { %p487_p11 = scmp.ne.s32.totalorder %s670_s6, %s486_s27  ;;  %p490_p12 = scmp.lt.u32.totalorder %s486_s27, %s670_s6 }
 0x2a6   :  { %p492_p13 = pnand %p490_p12, %p487_p11 }
 0x2a8   :  { %495 = shalt.err (!%p492_p13)
}
 0x2a9   :  { %282 = dma.vmem_to_hbm [thread:$0]  %s277_s21, 128, %s670_s6, [#allocation5], %s508_s9, %s508_s9, %s509_s10  }
 0x2aa   :  { %504 = dma.done.wait [#allocation5], 128  }
 0x2ab   :  { %505 = vsyncadd [#allocation5], 4294967168 }
 0x2ac   :  { %286 = vsyncpa [#allocation4], 1 }
 0x2ad   :  { %287 = vsyncpa [#allocation7], 1 }
 0x2ae   :  { %288 = vsyncpa [#allocation10], 1 }
 0x2af   :  { %289 = vsyncpa [#allocation13], 1 }
 0x2b0   :  { %290 = vsyncpa [#allocation5], 1 }

// kernel: albert_forward.17
= control target key start
LH: loop header
LB: loop body
LE: loop exit
PB: predicated region body
PF: predicated region fallthrough
CT: control target
= control target key end

     0   :  { %8 = vsyncpa [#allocation4], 0  ;;  %s465_s0 = inlined_call_operand.hbm [shape: bf16[16,64], index: 0, kind: input, shape index: {}]   ;;  %s466_s1 = inlined_call_operand.hbm [shape: bf16[64,192], index: 1, kind: input, shape index: {}]   ;;  %s467_s2 = inlined_call_operand.hbm [shape: bf16[1,192], index: 2, kind: input, shape index: {}]   ;;  %s468_s3 = inlined_call_operand.hbm [shape: bf16[16,192], index: 3, kind: output, shape index: {}]  }
   0x1   :  { %9 = vsyncpa [#allocation7], 0 }
   0x2   :  { %10 = vsyncpa [#allocation5], 0  ;;  %s376_s12 = smov [#allocation6]   ;;  %s282_s16 = scalar_lea.hbm %s466_s1, 1024 }
   0x3   :  { %s28_s13 = sshll.u32 %s376_s12, 4  ;;  %p283_p0 = scmp.ne.s32.totalorder %s466_s1, %s282_s16  ;;  %s29_s13 = int_to_ptr.vmem [resolvable:$true] %s28_s13 }
   0x4   :  { %p286_p1 = scmp.lt.u32.totalorder %s282_s16, %s466_s1 }
   0x6   :  { %p288_p2 = pnand %p286_p1, %p283_p0 }
   0x8   :  { %291 = shalt.err (!%p288_p2)
}
   0x9   :  { %s292_s21 = scalar_lea.vmem %s29_s13, 1024  ;;  %p297_p4 = scmp.lt.s32.totalorder %s29_s13, %s29_s13 }
   0xa   :  { %p293_p3 = scmp.ne.s32.totalorder %s29_s13, %s292_s21  ;;  %p298_p5 = scmp.lt.s32.totalorder %s292_s21, %s292_s21 }
   0xc   :  { %p299_p6 = por %p298_p5, %p297_p4 }
   0xe   :  { %p300_p7 = pnand %p299_p6, %p293_p3 }
  0x10   :  { %303 = shalt.err (!%p300_p7)
}
  0x11   :  { %s377_s22 = smov 128   ;;  %s378_s23 = smov 8  }
  0x12   :  { %34 = dma.hbm_to_vmem [thread:$0]  %s466_s1, 1024, %s29_s13, [#allocation7], %s377_s22, %s377_s22, %s378_s23  }
  0x13   :  { %s379_s26 = smov [#allocation3]   ;;  %s304_s30 = scalar_lea.hbm %s465_s0, 128 }
  0x14   :  { %s16_s27 = sshll.u32 %s379_s26, 4  ;;  %p305_p8 = scmp.ne.s32.totalorder %s465_s0, %s304_s30  ;;  %s17_s27 = int_to_ptr.vmem [resolvable:$true] %s16_s27 }
  0x15   :  { %p308_p9 = scmp.lt.u32.totalorder %s304_s30, %s465_s0 }
  0x17   :  { %p310_p10 = pnand %p308_p9, %p305_p8 }
  0x19   :  { %313 = shalt.err (!%p310_p10)
}
  0x1a   :  { %s314_s8 = scalar_lea.vmem %s17_s27, 128  ;;  %p319_p12 = scmp.lt.s32.totalorder %s17_s27, %s17_s27 }
  0x1b   :  { %p315_p11 = scmp.ne.s32.totalorder %s17_s27, %s314_s8  ;;  %p320_p13 = scmp.lt.s32.totalorder %s314_s8, %s314_s8 }
  0x1d   :  { %p321_p0 = por %p320_p13, %p319_p12 }
  0x1f   :  { %p322_p1 = pnand %p321_p0, %p315_p11 }
  0x21   :  { %325 = shalt.err (!%p322_p1)
}
  0x22   :  { %s380_s1 = smov 64   ;;  %s381_s9 = smov 4  }
  0x23   :  { %22 = dma.hbm_to_vmem [thread:$0]  %s465_s0, 128, %s17_s27, [#allocation4], %s380_s1, %s380_s1, %s381_s9  }
  0x24   :  { %s382_s12 = smov [#allocation8]   ;;  %s326_s16 = scalar_lea.hbm %s467_s2, 32 }
  0x25   :  { %s41_s13 = sshll.u32 %s382_s12, 4  ;;  %p327_p2 = scmp.ne.s32.totalorder %s467_s2, %s326_s16  ;;  %s42_s13 = int_to_ptr.vmem [resolvable:$true] %s41_s13 }
  0x26   :  { %p330_p3 = scmp.lt.u32.totalorder %s326_s16, %s467_s2 }
  0x28   :  { %p332_p4 = pnand %p330_p3, %p327_p2 }
  0x2a   :  { %335 = shalt.err (!%p332_p4)
}
  0x2b   :  { %s336_s21 = scalar_lea.vmem %s42_s13, 32  ;;  %p341_p6 = scmp.lt.s32.totalorder %s42_s13, %s42_s13 }
  0x2c   :  { %p337_p5 = scmp.ne.s32.totalorder %s42_s13, %s336_s21  ;;  %p342_p7 = scmp.lt.s32.totalorder %s336_s21, %s336_s21 }
  0x2e   :  { %p343_p8 = por %p342_p7, %p341_p6 }
  0x30   :  { %p344_p9 = pnand %p343_p8, %p337_p5 }
  0x32   :  { %347 = shalt.err (!%p344_p9)
}
  0x33   :  { %44 = dma.hbm_to_vmem [thread:$0]  %s467_s2, 32, %s42_s13, [#allocation7]  }
  0x34   :  { %370 = dma.done.wait [#allocation4], 128  }
  0x35   :  { %371 = vsyncadd [#allocation4], 4294967168 }
  0x36   :  { %372 = dma.done.wait [#allocation7], 1056  }
  0x37   :  { %373 = vsyncadd [#allocation7], 4294966240  ;;  %vm60_vm0 = vcmask 523264   ;;  %v383_v0 = vmov 0   ;;  %v384_v1 = vmov 0.0   ;;  %v281_v10 = vld [vmem:[#allocation3] sm:$0xff]   ;;  %v188_v11 = vlaneseq }
  0x38   :  { %159 = vmatprep.mubr.bf16.mxu0 %v383_v0  ;;  %61 = vst.msk [vmem:[#allocation2 + $0x8] sm:$0xff] %vm60_vm0, %v384_v1  ;;  %63 = vst.msk [vmem:[#allocation2 + $0x18] sm:$0xff] %vm60_vm0, %v384_v1  ;;  %v269_v2 = vld [vmem:[#allocation6 + $0x4] ss:$8 sps:$4 sm:$0xff]   ;;  %v271_v3 = vld [vmem:[#allocation6] ss:$8 sps:$4 sm:$0xff]  }
  0x39   :  { %127 = vmatprep.subr.bf16.mxu0 %v269_v2  ;;  %v272_v4 = vld [vmem:[#allocation6 + $0x14] ss:$8 sps:$4 sm:$0xff]   ;;  %v274_v5 = vld [vmem:[#allocation6 + $0x10] ss:$8 sps:$4 sm:$0xff]   ;;  %v275_v6 = vld [vmem:[#allocation6 + $0x24] ss:$8 sps:$4 sm:$0xff]  }
  0x3a   :  { %128 = vmatpush1.bf16.msra.mxu0 %v271_v3  ;;  %v277_v7 = vld [vmem:[#allocation6 + $0x20] ss:$8 sps:$4 sm:$0xff]   ;;  %v278_v8 = vld [vmem:[#allocation6 + $0x34] ss:$8 sps:$4 sm:$0xff]   ;;  %v280_v9 = vld [vmem:[#allocation6 + $0x30] ss:$8 sps:$4 sm:$0xff]  }
  0x3b   :  { %129 = vmatprep.subr.bf16.mxu0 %v272_v4  ;;  %v189_v12 = vshrl.u32 %v188_v11, 7  ;;  %v185_v13 = vld [vmem:[#allocation8] sm:$0x3]  ;;  %vm222_vm1 = vcmask 1043456   ;;  %vm223_vm2 = vcmask 523268   ;;  %s385_s2 = smov [#allocation9]  }
  0x3c   :  { %v186_v16 = vunpack.c.l.bf16 %v185_v13  ;;  %vm224_vm3 = vmor %vm223_vm2, %vm222_vm1  ;;  %s232_s25 = sshll.u32 %s385_s2, 4  ;;  %s233_s25 = int_to_ptr.vmem [resolvable:$true] %s232_s25 }
  0x3d   :  { %v190_v17 = vsub.s32 0, %v189_v12  ;;  %v194_v18 = vsub.s32 2, %v189_v12  ;;  %s348_s26 = scalar_lea.vmem %s233_s25, 256  ;;  %p353_p11 = scmp.lt.s32.totalorder %s233_s25, %s233_s25 }
  0x3e   :  { %130 = vmatpush1.bf16.msra.mxu0 %v274_v5  ;;  %p349_p10 = scmp.ne.s32.totalorder %s233_s25, %s348_s26  ;;  %p354_p12 = scmp.lt.s32.totalorder %s348_s26, %s348_s26 }
  0x3f   :  { %131 = vmatprep.subr.bf16.mxu0 %v275_v6  ;;  %v65_v14 = vld [vmem:[#allocation2 + $0x8] sm:$0xff]  ;;  %v67_v20 = vld [vmem:[#allocation2 + $0x18] sm:$0xff]  ;;  %v191_v25 = vrot.slane %v186_v16, %v190_v17  ;;  %v195_v26 = vrot.slane %v186_v16, %v194_v18 }
  0x40   :  { %p355_p13 = por %p354_p12, %p353_p11 }
  0x41   :  { %v201_v27 = vrot.slane %v191_v25, %v190_v17  ;;  %v205_v28 = vrot.slane %v195_v26, %v190_v17 }
  0x42   :  { %132 = vmatpush1.bf16.msra.mxu0 %v277_v7  ;;  %p356_p0 = pnand %p355_p13, %p349_p10 }
  0x43   :  { %133 = vmatprep.subr.bf16.mxu0 %v278_v8 }
  0x46   :  { %134 = vmatpush1.bf16.msra.mxu0 %v280_v9 }
  0x49   :  { %254 = vmatmul.mubr.msk.bf16.vlgmr.msra.gmra.mrb[0].mxu0 %vm60_vm0, %v281_v10 }
 0x11c   :  { %v161_v15 = vpop.f32.mrb[0].mxu0 }
 0x11d   :  { %v163_v19 = vpop.f32.mrb[1].mxu0  ;;  %v206_v30 = vadd.f32 %v201_v27, %v161_v15 }
 0x11e   :  { %v171_v21 = vadd.f32 %v163_v19, %v65_v14  ;;  %v165_v22 = vpop.f32.mrb[2].mxu0 }
 0x11f   :  { %v167_v23 = vpop.f32.mrb[3].mxu0  ;;  %v208_v33 = vadd.f32 %v201_v27, %v165_v22 }
 0x120   :  { %175 = vst.msk [vmem:[#allocation2 + $0x8] sm:$0xff] %vm60_vm0, %v171_v21  ;;  %v173_v24 = vadd.f32 %v167_v23, %v67_v20 }
 0x122   :  { %177 = vst.msk [vmem:[#allocation2 + $0x18] sm:$0xff] %vm60_vm0, %v173_v24 }
 0x127   :  { %v182_v29 = vld [vmem:[#allocation2 + $0x8] sm:$0xff] }
 0x128   :  { %v207_v31 = vadd.f32 %v205_v28, %v182_v29 }
 0x129   :  { %v184_v32 = vld [vmem:[#allocation2 + $0x18] sm:$0xff] }
 0x12a   :  { %v209_v34 = vadd.f32 %v205_v28, %v184_v32  ;;  %v257_v35 = vpack.c.bf16 %v207_v31, %v206_v30 }
 0x12c   :  { %v258_v36 = vpack.c.bf16 %v209_v34, %v208_v33  ;;  %225 = vst.msk [vmem:[#allocation9] sm:$0xff] %vm224_vm3, %v257_v35 }
 0x12e   :  { %226 = vst.msk [vmem:[#allocation9 + $0x8] sm:$0xff] %vm224_vm3, %v258_v36 }
 0x12f   :  { %359 = shalt.err (!%p356_p0)
}
 0x130   :  { %s360_s29 = scalar_lea.hbm %s468_s3, 256 }
 0x131   :  { %p361_p1 = scmp.ne.s32.totalorder %s468_s3, %s360_s29  ;;  %p364_p2 = scmp.lt.u32.totalorder %s360_s29, %s468_s3 }
 0x133   :  { %p366_p3 = pnand %p364_p2, %p361_p1 }
 0x135   :  { %369 = shalt.err (!%p366_p3)
}
 0x136   :  { %238 = dma.vmem_to_hbm [thread:$0]  %s233_s25, 256, %s468_s3, [#allocation5], %s377_s22, %s377_s22, %s378_s23  }
 0x137   :  { %374 = dma.done.wait [#allocation5], 256  }
 0x138   :  { %375 = vsyncadd [#allocation5], 4294967040 }
 0x139   :  { %242 = vsyncpa [#allocation4], 1 }
 0x13a   :  { %243 = vsyncpa [#allocation7], 1 }
 0x13b   :  { %244 = vsyncpa [#allocation5], 1 }

// kernel: albert_forward.16
= control target key start
LH: loop header
LB: loop body
LE: loop exit
PB: predicated region body
PF: predicated region fallthrough
CT: control target
= control target key end

     0   :  { %8 = vsyncpa [#allocation4], 0  ;;  %s399_s0 = inlined_call_operand.hbm [shape: bf16[16,32], index: 0, kind: input, shape index: {}]   ;;  %s400_s1 = inlined_call_operand.hbm [shape: bf16[32,64], index: 1, kind: input, shape index: {}]   ;;  %s401_s2 = inlined_call_operand.hbm [shape: bf16[1,64], index: 2, kind: input, shape index: {}]   ;;  %s402_s3 = inlined_call_operand.hbm [shape: bf16[16,64], index: 3, kind: output, shape index: {}]  }
   0x1   :  { %9 = vsyncpa [#allocation7], 0 }
   0x2   :  { %10 = vsyncpa [#allocation5], 0  ;;  %s303_s12 = smov [#allocation6]   ;;  %s304_s14 = smov [#allocation3]  }
   0x3   :  { %s28_s13 = sshll.u32 %s303_s12, 4  ;;  %s16_s15 = sshll.u32 %s304_s14, 4  ;;  %s29_s13 = int_to_ptr.vmem [resolvable:$true] %s28_s13  ;;  %s331_s15 = int_to_ptr.vmem [resolvable:$true] %s16_s15 }
   0x4   :  { %s209_s18 = scalar_lea.hbm %s400_s1, 256 }
   0x5   :  { %p210_p0 = scmp.ne.s32.totalorder %s400_s1, %s209_s18  ;;  %p213_p1 = scmp.lt.u32.totalorder %s209_s18, %s400_s1 }
   0x7   :  { %p215_p2 = pnand %p213_p1, %p210_p0 }
   0x9   :  { %218 = shalt.err (!%p215_p2)
}
   0xa   :  { %s219_s23 = scalar_lea.vmem %s29_s13, 256  ;;  %p224_p4 = scmp.lt.s32.totalorder %s29_s13, %s29_s13 }
   0xb   :  { %p220_p3 = scmp.ne.s32.totalorder %s29_s13, %s219_s23  ;;  %p225_p5 = scmp.lt.s32.totalorder %s219_s23, %s219_s23 }
   0xd   :  { %p226_p6 = por %p225_p5, %p224_p4 }
   0xf   :  { %p227_p7 = pnand %p226_p6, %p220_p3 }
  0x11   :  { %230 = shalt.err (!%p227_p7)
}
  0x12   :  { %s305_s24 = smov 64   ;;  %s306_s25 = smov 4  }
  0x13   :  { %34 = dma.hbm_to_vmem [thread:$0]  %s400_s1, 256, %s29_s13, [#allocation7], %s305_s24, %s305_s24, %s306_s25  }
  0x14   :  { %s231_s30 = scalar_lea.hbm %s399_s0, 128 }
  0x15   :  { %p232_p8 = scmp.ne.s32.totalorder %s399_s0, %s231_s30  ;;  %p235_p9 = scmp.lt.u32.totalorder %s231_s30, %s399_s0 }
  0x17   :  { %p237_p10 = pnand %p235_p9, %p232_p8 }
  0x19   :  { %240 = shalt.err (!%p237_p10)
}
  0x1a   :  { %s241_s8 = scalar_lea.vmem %s331_s15, 128  ;;  %p246_p12 = scmp.lt.s32.totalorder %s331_s15, %s331_s15 }
  0x1b   :  { %p242_p11 = scmp.ne.s32.totalorder %s331_s15, %s241_s8  ;;  %p247_p13 = scmp.lt.s32.totalorder %s241_s8, %s241_s8 }
  0x1d   :  { %p248_p0 = por %p247_p13, %p246_p12 }
  0x1f   :  { %p249_p1 = pnand %p248_p0, %p242_p11 }
  0x21   :  { %252 = shalt.err (!%p249_p1)
}
  0x22   :  { %22 = dma.hbm_to_vmem [thread:$0]  %s399_s0, 128, %s331_s15, [#allocation4], %s305_s24, %s305_s24, %s306_s25  }
  0x23   :  { %s307_s10 = smov [#allocation8]   ;;  %s253_s14 = scalar_lea.hbm %s401_s2, 16 }
  0x24   :  { %s41_s11 = sshll.u32 %s307_s10, 4  ;;  %p254_p2 = scmp.ne.s32.totalorder %s401_s2, %s253_s14  ;;  %s42_s11 = int_to_ptr.vmem [resolvable:$true] %s41_s11 }
  0x25   :  { %p257_p3 = scmp.lt.u32.totalorder %s253_s14, %s401_s2 }
  0x27   :  { %p259_p4 = pnand %p257_p3, %p254_p2 }
  0x29   :  { %262 = shalt.err (!%p259_p4)
}
  0x2a   :  { %s263_s20 = scalar_lea.vmem %s42_s11, 16  ;;  %s267_s0 = scalar_lea.vmem %s42_s11, 32 }
  0x2b   :  { %p264_p5 = scmp.ne.s32.totalorder %s42_s11, %s263_s20  ;;  %p268_p6 = scmp.lt.s32.totalorder %s42_s11, %s42_s11 }
  0x2c   :  { %p269_p7 = scmp.lt.s32.totalorder %s267_s0, %s263_s20 }
  0x2e   :  { %p270_p8 = por %p269_p7, %p268_p6 }
  0x30   :  { %p271_p9 = pnand %p270_p8, %p264_p5 }
  0x32   :  { %274 = shalt.err (!%p271_p9)
}
  0x33   :  { %44 = dma.hbm_to_vmem [thread:$0]  %s401_s2, 16, %s42_s11, [#allocation7]  }
  0x34   :  { %297 = dma.done.wait [#allocation4], 128  }
  0x35   :  { %298 = vsyncadd [#allocation4], 4294967168 }
  0x36   :  { %299 = dma.done.wait [#allocation7], 272  }
  0x37   :  { %300 = vsyncadd [#allocation7], 4294967024  ;;  %vm59_vm0 = vcmask 523264   ;;  %v308_v0 = vmov 0.0   ;;  %vm309_vm1 = vmmov 0   ;;  %v206_v1 = vld [vmem:[#allocation6] sm:$0xff]   ;;  %v144_v4 = vlaneseq }
  0x38   :  { %60 = vst.msk [vmem:[#allocation2] sm:$0xff] %vm59_vm0, %v308_v0  ;;  %61 = vst.msk [vmem:[#allocation2 + $0x8] sm:$0xff] %vm59_vm0, %v308_v0  ;;  %190 = vmatprep.subr.bf16.mxu0 %v308_v0  ;;  %194 = vmatprep.mubr.msk.bf16.mxu0 %vm309_vm1, %v308_v0  ;;  %v207_v2 = vld [vmem:[#allocation6 + $0x8] sm:$0xff]   ;;  %v208_v3 = vld [vmem:[#allocation3] sm:$0xff]   ;;  %vm87_vm2 = vcmask 261120   ;;  %vm158_vm3 = vcmask 519168  }
  0x39   :  { %191 = vmatpush3.bf16.msra.mxu0 %v206_v1  ;;  %v145_v6 = vshrl.u32 %v144_v4, 7  ;;  %v142_v9 = vld [vmem:[#allocation8] sm:$0x1]  ;;  %s310_s2 = smov [#allocation9]  }
  0x3a   :  { %192 = vmatprep.subr.bf16.mxu0 %v308_v0  ;;  %v143_v15 = vunpack.c.l.bf16 %v142_v9  ;;  %s166_s22 = sshll.u32 %s310_s2, 4  ;;  %s167_s22 = int_to_ptr.vmem [resolvable:$true] %s166_s22 }
  0x3b   :  { %v146_v16 = vsub.s32 0, %v145_v6  ;;  %s275_s23 = scalar_lea.vmem %s167_s22, 128  ;;  %p280_p11 = scmp.lt.s32.totalorder %s167_s22, %s167_s22 }
  0x3c   :  { %p276_p10 = scmp.ne.s32.totalorder %s167_s22, %s275_s23  ;;  %p281_p12 = scmp.lt.s32.totalorder %s275_s23, %s275_s23 }
  0x3d   :  { %193 = vmatpush3.bf16.msra.mxu0 %v207_v2  ;;  %v147_v17 = vrot.slane %v143_v15, %v146_v16 }
  0x3e   :  { %p282_p13 = por %p281_p12, %p280_p11 }
  0x3f   :  { %v62_v5 = vld [vmem:[#allocation2] sm:$0xff]  ;;  %v63_v8 = vld [vmem:[#allocation2 + $0x8] sm:$0xff] }
  0x40   :  { %195 = vmatmul.mubr.msk.bf16.vlgmr.msra.gmra.mrb[0].mxu0 %vm87_vm2, %v208_v3  ;;  %p283_p0 = pnand %p282_p13, %p276_p10 }
 0x113   :  { %v125_v7 = vpop.f32.mrb[0].mxu0 }
 0x114   :  { %v132_v10 = vadd.f32 %v125_v7, %v62_v5  ;;  %v196_v11 = vpop.f32.mrb[1].mxu0 }
 0x115   :  { %v128_v12 = vpop.f32.mrb[2].mxu0 }
 0x116   :  { %135 = vst.msk [vmem:[#allocation2] sm:$0xff] %vm59_vm0, %v132_v10  ;;  %v133_v13 = vadd.f32 %v128_v12, %v63_v8  ;;  %v197_v14 = vpop.f32.mrb[3].mxu0 }
 0x118   :  { %136 = vst.msk [vmem:[#allocation2 + $0x8] sm:$0xff] %vm59_vm0, %v133_v13 }
 0x11d   :  { %v140_v18 = vld [vmem:[#allocation2] sm:$0xff] }
 0x11e   :  { %v148_v19 = vadd.f32 %v147_v17, %v140_v18 }
 0x11f   :  { %v141_v20 = vld [vmem:[#allocation2 + $0x8] sm:$0xff] }
 0x120   :  { %v149_v21 = vadd.f32 %v147_v17, %v141_v20  ;;  %v185_v22 = vpack.c.bf16 %v148_v19, %v148_v19 }
 0x122   :  { %v186_v23 = vpack.c.bf16 %v149_v21, %v149_v21  ;;  %159 = vst.msk [vmem:[#allocation9] sm:$0xf] %vm158_vm3, %v185_v22 }
 0x124   :  { %160 = vst.msk [vmem:[#allocation9 + $0x4] sm:$0xf] %vm158_vm3, %v186_v23 }
 0x125   :  { %286 = shalt.err (!%p283_p0)
}
 0x126   :  { %s287_s28 = scalar_lea.hbm %s402_s3, 128 }
 0x127   :  { %p288_p1 = scmp.ne.s32.totalorder %s402_s3, %s287_s28  ;;  %p291_p2 = scmp.lt.u32.totalorder %s287_s28, %s402_s3 }
 0x129   :  { %p293_p3 = pnand %p291_p2, %p288_p1 }
 0x12b   :  { %296 = shalt.err (!%p293_p3)
}
 0x12c   :  { %172 = dma.vmem_to_hbm [thread:$0]  %s167_s22, 128, %s402_s3, [#allocation5], %s305_s24, %s305_s24, %s306_s25  }
 0x12d   :  { %301 = dma.done.wait [#allocation5], 128  }
 0x12e   :  { %302 = vsyncadd [#allocation5], 4294967168 }
 0x12f   :  { %176 = vsyncpa [#allocation4], 1 }
 0x130   :  { %177 = vsyncpa [#allocation7], 1 }
 0x131   :  { %178 = vsyncpa [#allocation5], 1 }

// kernel: albert_forward.18
= control target key start
LH: loop header
LB: loop body
LE: loop exit
PB: predicated region body
PF: predicated region fallthrough
CT: control target
= control target key end

     0   :  { %7 = vsyncpa [#allocation3], 0  ;;  %s1585_s0 = inlined_call_operand.hbm [shape: bf16[16,192], index: 0, kind: input, shape index: {}]   ;;  %s1586_s1 = inlined_call_operand.hbm [shape: f32[2,1,8], index: 1, kind: input, shape index: {}]   ;;  %s1587_s2 = inlined_call_operand.hbm [shape: bf16[16,64], index: 2, kind: output, shape index: {}]  }
   0x1   :  { %9 = vsyncpa [#allocation3 + $0x1], 0 }
   0x2   :  { %10 = vsyncpa [#allocation6], 0 }
   0x3   :  { %12 = vsyncpa [#allocation6 + $0x1], 0 }
   0x4   :  { %13 = vsyncpa [#allocation4], 0 }
   0x5   :  { %15 = vsyncpa [#allocation4 + $0x1], 0  ;;  %s1314_s9 = smov 0   ;;  %s1316_s10 = smov 0  }
   0x6   :  { %s1318_s11 = smov 0   ;;  %s1320_s12 = smov 0  }
   0x7 LB: > { %s1335_s13 = sadd.s32 4294967295, %s1285_s12   ;;  %s995_s14 = sadd.s32 4294967294, %s1285_s12   ;;  %s1285_s12 = sphi %s1320_s12, %s1606_s12   ;;  %s1281_s11 = sphi %s1318_s11, %s1605_s11   ;;  %s1277_s10 = sphi %s1316_s10, %s1604_s10   ;;  %s1273_s9 = sphi %s1314_s9, %s1603_s9  }
   0x8   : > { %s1339_s15 = sadd.s32 1, %s1285_s12   ;;  %s28_s16 = sadd.s32 1, %s1281_s11 }
   0x9   : > { %s25_s17 = ssub.s32 %s1285_s12, %s1339_s15  ;;  %p35_p0 = scmp.ne.s32.totalorder %s1281_s11, %s1277_s10 }
   0xa   : > { %p26_p1 = scmp.eq.s32.totalorder %s25_s17, 0  ;;  %p36_p2 = scmp.eq.s32.totalorder %s1285_s12, 0 }
   0xb   : > { %p41_p3 = scmp.ne.s32.totalorder %s1277_s10, %s1273_s9  ;;  %p42_p4 = scmp.eq.s32.totalorder %s1335_s13, 0 }
   0xc   : > { %s1351_s18 = scalar_select %p26_p1, %s1281_s11, %s28_s16  }
   0xd   : > { %p1353_p5 = por %p36_p2, %p35_p0  ;;  %p1357_p6 = por %p42_p4, %p41_p3 }
   0xe   : > { %p91_p7 = scmp.eq.s32.totalorder %s1335_s13, 1  ;;  %p97_p8 = scmp.eq.s32.totalorder %s995_s14, 1 }
   0xf   : > { %s1591_s20 = scalar_select %p1357_p6, 1, 0 }
  0x10   : > { %p1096_p10 = scmp.lt.s32.totalorder %s1285_s12, 2  ;;  %p1364_p11 = por %p91_p7, %p35_p0 }
  0x11   : > { %p1368_p12 = por %p97_p8, %p41_p3  ;;  %s1373_s23 = sand.u32 1, %s1281_s11  }
  0x12   : > { %s1592_s21 = scalar_select %p1364_p11, 1, 0 }
  0x13   : > { %s1593_s22 = scalar_select %p1368_p12, 1, 0 }
  0x14   : > { %s1022_s24 = sshll.u32 %s1285_s12, 7  ;;  %s998_s25 = sshll.u32 %s1373_s23, 3 }
  0x15   : > { %s1380_s28 = scalar_lea.hbm %s1585_s0, %s1022_s24  ;;  %s121_s29 = scalar_lea.vmem [#allocation2], %s998_s25 }
  0x16   : > { %s129_s30 = sshll.u32 %s121_s29, 4  ;;  %p1384_p13 = pnand %p1096_p10, %p1353_p5  ;;  %s1388_s30 = int_to_ptr.vmem [resolvable:$true] %s129_s30 }
  0x17   : > { %s118_s4 = scalar_lea.sflag [#allocation3], %s1373_s23  ;;  %s1155_s5 = scalar_lea.hbm %s1380_s28, 128 }
  0x18   : > { %p1156_p2 = scmp.ne.s32.totalorder %s1380_s28, %s1155_s5  ;;  %p1157_p3 = pneg %p1384_p13 }
  0x19   : > { %s1160_s8 = scalar_lea.hbm %s1585_s0, 256  ;;  %p1161_p5 = scmp.lt.u32.totalorder %s1380_s28, %s1585_s0 }
  0x1a   : > { %p1158_p4 = pnand %p1157_p3, %p1156_p2  ;;  %p1162_p8 = scmp.lt.u32.totalorder %s1160_s8, %s1155_s5 }
  0x1b   : > { %p1164_p9 = scmp.lt.u32.totalorder %s1155_s5, %s1380_s28 }
  0x1c   : > { %p1159_p7 = pneg %p1158_p4  ;;  %p1163_p10 = por %p1162_p8, %p1161_p5 }
  0x1e   : > { %p1165_p0 = por %p1164_p9, %p1163_p10 }
  0x20   : > { %p1166_p1 = pnand %p1165_p0, %p1159_p7 }
  0x22   : > { %1169 = shalt.err (!%p1166_p1)
}
  0x23   : > { %s1170_s17 = scalar_lea.vmem %s1388_s30, 128  ;;  %s1287_s19 = smov [#allocation2]  }
  0x24   : > { %p1171_p2 = scmp.ne.s32.totalorder %s1388_s30, %s1170_s17  ;;  %s1175_s24 = sshll.u32 %s1287_s19, 4  ;;  %s1176_s24 = int_to_ptr.vmem [resolvable:$false] %s1175_s24 }
  0x25   : > { %s1177_s25 = scalar_lea.vmem %s1176_s24, 256  ;;  %p1178_p11 = scmp.lt.s32.totalorder %s1388_s30, %s1176_s24 }
  0x26   : > { %p1173_p4 = pnand %p1171_p2, %p1157_p3  ;;  %p1179_p5 = scmp.lt.s32.totalorder %s1177_s25, %s1170_s17 }
  0x28   : > { %p1174_p12 = pneg %p1173_p4  ;;  %p1180_p8 = por %p1179_p5, %p1178_p11 }
  0x2a   : > { %p1181_p9 = pnand %p1180_p8, %p1174_p12 }
  0x2c   : > { %1184 = shalt.err (!%p1181_p9)
}
  0x2d   : > { %1088 = dma.hbm_to_vmem [thread:$0]  (!%p1384_p13), %s1380_s28, 128, %s1388_s30, %s118_s4  }
  0x2e   : > { %p1595_p0 = scmp.lt.s32.totalorder %s1285_s12, 3  ;;  %p1596_p1 = scmp.ge.s32.totalorder %s1285_s12, 1 }
  0x2f   : > { %s1001_s27 = sshll.u32 %s1285_s12, 4  ;;  %s139_s7 = scalar_lea.vmem [#allocation5], %s1373_s23 }
  0x30   : > { %p1422_p7 = pnand %p1596_p1, %p1595_p0  ;;  %s1430_s6 = scalar_lea.hbm %s1586_s1, %s1001_s27 }
  0x31   : > { %s146_s8 = sshll.u32 %s139_s7, 4  ;;  %s137_s28 = scalar_lea.sflag [#allocation6], %s1373_s23  ;;  %s147_s8 = int_to_ptr.vmem [resolvable:$true] %s146_s8 }
  0x32   : > { %s1597_s26 = scalar_select %p1422_p7, 1, 0 }
  0x33   : > { %s1185_s30 = scalar_lea.hbm %s1430_s6, 16  ;;  %s1190_s16 = scalar_lea.hbm %s1586_s1, 32 }
  0x34   : > { %p1186_p11 = scmp.ne.s32.totalorder %s1430_s6, %s1185_s30  ;;  %p1191_p2 = scmp.lt.u32.totalorder %s1430_s6, %s1586_s1 }
  0x35   : > { %p1192_p4 = scmp.lt.u32.totalorder %s1190_s16, %s1185_s30  ;;  %p1194_p8 = scmp.lt.u32.totalorder %s1185_s30, %s1430_s6 }
  0x36   : > { %p1188_p12 = pnand %p1186_p11, %p1157_p3 }
  0x37   : > { %p1193_p5 = por %p1192_p4, %p1191_p2 }
  0x38   : > { %p1189_p10 = pneg %p1188_p12 }
  0x39   : > { %p1195_p9 = por %p1194_p8, %p1193_p5 }
  0x3b   : > { %p1196_p0 = pnand %p1195_p9, %p1189_p10 }
  0x3d   : > { %1199 = shalt.err (!%p1196_p0)
}
  0x3e   : > { %s1200_s23 = scalar_lea.vmem %s147_s8, 16  ;;  %s1288_s24 = smov [#allocation5]  }
  0x3f   : > { %p1201_p1 = scmp.ne.s32.totalorder %s147_s8, %s1200_s23  ;;  %s1205_s25 = sshll.u32 %s1288_s24, 4  ;;  %s1206_s25 = int_to_ptr.vmem [resolvable:$false] %s1205_s25 }
  0x40   : > { %s1207_s27 = scalar_lea.vmem %s1206_s25, 32  ;;  %p1208_p6 = scmp.lt.s32.totalorder %s147_s8, %s1206_s25 }
  0x41   : > { %p1203_p11 = pnand %p1201_p1, %p1157_p3  ;;  %p1209_p7 = scmp.lt.s32.totalorder %s1207_s27, %s1200_s23 }
  0x43   : > { %p1204_p12 = pneg %p1203_p11  ;;  %p1210_p2 = por %p1209_p7, %p1208_p6 }
  0x45   : > { %p1211_p4 = pnand %p1210_p2, %p1204_p12 }
  0x47   : > { %1214 = shalt.err (!%p1211_p4)
}
  0x48   : > { %1091 = dma.hbm_to_vmem [thread:$0]  (!%p1384_p13), %s1430_s6, 16, %s147_s8, %s137_s28  }
  0x49   : > { %p1598_p10 = scmp.ne.s32.totalorder %s1597_s26, 0 }
  0x4a   : > { %s1456_s29 = sand.u32 (!%p1598_p10), 1, %s1277_s10   ;;  %p1599_p3 = scmp.ne.s32.totalorder (!%p1598_p10), %s1591_s20, 0 }
  0x4b   : > { %155 = sbr.rel (%p1598_p10) target bundleno = 1622 (0x656), region = 28  ;;  %s1003_s5 = sshll.u32 (!%p1598_p10), %s1456_s29, 3 }
  0x4c   : > { %s158_s7 = scalar_lea.sflag (!%p1598_p10), [#allocation3], %s1456_s29  ;;  %s161_s30 = scalar_lea.vmem (!%p1598_p10), [#allocation2], %s1003_s5 }
  0x52   : > { %1260 = dma.done.wait (%p1599_p3), %s158_s7, 128  }
  0x53   : > { %1262 = vsyncadd (%p1599_p3), %s158_s7, 4294967168  ;;  %s167_s3 = scalar_lea.sflag [#allocation6], %s1456_s29  ;;  %s169_s26 = scalar_lea.vmem [#allocation5], %s1456_s29 }
  0x54   : > { %1264 = dma.done.wait (%p1599_p3), %s167_s3, 16  }
  0x55   : > { %1266 = vsyncadd (%p1599_p3), %s167_s3, 4294967280  ;;  %v1289_v0 = vmov 0.0   ;;  %vm1290_vm0 = vmmov 0   ;;  %v194_v1 = vld [vmem:[%s161_s30] sm:$0xff]  ;;  %s1291_s6 = smov 64   ;;  %vm201_vm1 = vcmask 130048  }
  0x56   : > { %1039 = vmatprep.subr.mxu0 %v1289_v0  ;;  %1041 = vmatprep.mubr.msk.f32.mxu0 %vm1290_vm0, %v1289_v0  ;;  %v195_v2 = vunpack.c.l.bf16 %v194_v1  ;;  %s1292_s20 = smov 48   ;;  %s1293_s8 = smov 112   ;;  %v1007_v5 = vld [vmem:[%s169_s26] ss:$0 sm:$0xff]  ;;  %vm284_vm2 = vcmask 64512   ;;  %v1488_v15 = vunpack.c.h.bf16 %v194_v1  ;;  %vm884_vm3 = vcmask 261120  }
  0x57   : > { %1044 = vmatprep.subr.mxu1 %v1289_v0  ;;  %1046 = vmatprep.mubr.msk.f32.mxu1 %vm1290_vm0, %v1289_v0  ;;  %s1294_s28 = smov 32   ;;  %s1295_s4 = smov 96   ;;  %vm886_vm4 = vcmask 392192   ;;  %vm889_vm5 = vcmask 519168  }
  0x58   : > { %199 = vrot.lane.b32.xlu0 %v195_v2, %s1291_s6  ;;  %371 = vrot.lane.b32.xlu1 %v195_v2, %s1292_s20  ;;  %s1296_s14 = smov 80   ;;  %s1297_s16 = smov 16  }
  0x59   : > { %1045 = vmatpush3.msra.mxu1 %v1488_v15  ;;  %s1004_s17 = sshll.u32 %s1456_s29, 2  ;;  %s1019_s19 = sshll.u32 %s1335_s13, 6 }
  0x5a   : > { %1049 = vmatprep.subr.mxu1 %v1289_v0  ;;  %s193_s23 = scalar_lea.vmem [#allocation7], %s1004_s17  ;;  %s1541_s5 = scalar_lea.hbm %s1587_s2, %s1019_s19 }
  0x5b   : > { %s905_s24 = sshll.u32 %s193_s23, 4  ;;  %s892_s7 = scalar_lea.sflag [#allocation4], %s1456_s29  ;;  %s1543_s24 = int_to_ptr.vmem [resolvable:$true] %s905_s24 }
  0x5c   : > { %369 = vrot.lane.b32.xlu1 %v195_v2, %s1293_s8  ;;  %s1215_s13 = scalar_lea.vmem %s1543_s24, 64  ;;  %p1600_p13 = scmp.ne.s32.totalorder %s1592_s21, 0 }
  0x5d   : > { %p1216_p6 = scmp.ne.s32.totalorder %s1543_s24, %s1215_s13  ;;  %s1298_s30 = smov [#allocation7]  }
  0x5e   : > { %s1219_s3 = sshll.u32 %s1298_s30, 4  ;;  %s1220_s3 = int_to_ptr.vmem [resolvable:$false] %s1219_s3 }
  0x5f   : > { %p1217_p7 = pnand %p1216_p6, %p1600_p13  ;;  %s1221_s26 = scalar_lea.vmem %s1220_s3, 128 }
  0x60   : > { %539 = vrot.lane.b32.xlu1 %v195_v2, %s1294_s28  ;;  %p1222_p8 = scmp.lt.s32.totalorder %s1543_s24, %s1220_s3  ;;  %p1223_p9 = scmp.lt.s32.totalorder %s1221_s26, %s1215_s13 }
  0x61   : > { %p1218_p5 = pneg %p1217_p7 }
  0x62   : > { %p1224_p0 = por %p1223_p9, %p1222_p8 }
  0x64   : > { %537 = vrot.lane.b32.xlu1 %v195_v2, %s1295_s4  ;;  %p1225_p1 = pnand %p1224_p0, %p1218_p5 }
  0xca   : > { %v200_v3 = vpop.permute.xlu0 %199  ;;  %v372_v16 = vpop.permute.xlu1 %371 }
  0xcb   : > { %1040 = vmatpush3.xpose.msk.msra.mxu0 %vm201_vm1, %v200_v3 }
  0xcc   : > { %1054 = vmatprep.subr.mxu0 %v1289_v0 }
  0xce   : > { %1042 = vmatmul.mubr.msk.f32.vlgmr.msra.gmra.mrb[0].mxu0 %vm201_vm1, %v195_v2  ;;  %v370_v17 = vpop.permute.xlu1 %369 }
  0xcf   : > { %1056 = vmatprep.mubr.msk.f32.mxu0 %vm1290_vm0, %v1289_v0 }
  0xd2   : > { %v540_v18 = vpop.permute.xlu1 %539 }
  0xd6   : > { %v538_v19 = vpop.permute.xlu1 %537 }
 0x1a1   : > { %v272_v4 = vpop.f32.mrb[0].mxu0 }
 0x1a2   : > { %v276_v6 = vmul.f32 0.25, %v272_v4  ;;  %v1043_v7 = vpop.f32.mrb[1].mxu0 }
 0x1a4   : > { %v283_v8 = vadd.f32 %v1007_v5, %v276_v6 }
 0x1a6   : > { %v285_v9 = vsel %vm284_vm2, %v283_v8, -inf }
 0x1a7   : > { %286 = vmax.xlane.f32.xlu0 %v285_v9 }
 0x1bd   : > { %704 = vrot.lane.b32.xlu0 %v195_v2, %s1296_s14 }
 0x234   : > { %v287_v10 = vpop.xlane.xlu0 %286 }
 0x235   : > { %v288_v11 = vsub.f32 %v283_v8, %v287_v10 }
 0x237   : > { %v289_v12 = vmul.f32 1.442695, %v288_v11 }
 0x238   : > { %v705_v24 = vpop.permute.xlu0 %704 }
 0x239   : > { %1139 = vpow2.f32 %v289_v12 }
 0x243   : > { %v1140_v13 = vpop.eup %1139 }
 0x244   : > { %v291_v14 = vsel %vm284_vm2, %v1140_v13, 0.0 }
 0x245   : > { %292 = vadd.xlane.f32.xlu1 %v291_v14 }
 0x256   : > { %706 = vrot.lane.b32.xlu1 %v195_v2, %s1297_s16 }
 0x2d2   : > { %v293_v20 = vpop.xlane.xlu1 %292 }
 0x2d3   : > { %1141 = vrcp.f32 %v293_v20 }
 0x2d6   : > { %v707_v23 = vpop.permute.xlu1 %706 }
 0x2dd   : > { %v1142_v21 = vpop.eup %1141 }
 0x2de   : > { %v295_v22 = vmul.f32 %v1142_v21, %v1140_v13 }
 0x2e0   : > { %1047 = vmatmul.mubr.msk.f32.vlgmr.msra.gmra.mrb[0].mxu1 %vm284_vm2, %v295_v22 }
 0x2e1   : > { %1050 = vmatpush3.xpose.msk.msra.mxu1 %vm201_vm1, %v372_v16  ;;  %1051 = vmatprep.mubr.msk.f32.mxu1 %vm1290_vm0, %v1289_v0 }
 0x2e2   : > { %1059 = vmatprep.subr.mxu1 %v1289_v0 }
 0x2e4   : > { %1052 = vmatmul.mubr.msk.f32.vlgmr.msra.gmra.mrb[2].mxu1 %vm201_vm1, %v370_v17 }
 0x2e5   : > { %1060 = vmatpush3.xpose.msk.msra.mxu1 %vm201_vm1, %v540_v18  ;;  %1061 = vmatprep.mubr.msk.f32.mxu1 %vm1290_vm0, %v1289_v0 }
 0x2e6   : > { %1069 = vmatprep.subr.mxu1 %v1289_v0 }
 0x2e8   : > { %1062 = vmatmul.mubr.msk.f32.vlgmr.msra.gmra.mrb[4].mxu1 %vm201_vm1, %v538_v19 }
 0x2e9   : > { %1070 = vmatpush3.xpose.msk.msra.mxu1 %vm201_vm1, %v707_v23  ;;  %1071 = vmatprep.mubr.msk.f32.mxu1 %vm1290_vm0, %v1289_v0 }
 0x2ec   : > { %1072 = vmatmul.mubr.msk.f32.vlgmr.msra.gmra.mrb[6].mxu1 %vm201_vm1, %v705_v24 }
 0x3b3   : > { %v1508_v25 = vpop.f32.mrb[0].mxu1 }
 0x3b4   : > { %v1048_v26 = vpop.f32.mrb[1].mxu1 }
 0x3b7   : > { %v443_v27 = vpop.f32.mrb[2].mxu1 }
 0x3b8   : > { %v447_v28 = vmul.f32 0.25, %v443_v27  ;;  %v1053_v29 = vpop.f32.mrb[3].mxu1 }
 0x3ba   : > { %v448_v30 = vadd.f32 %v1007_v5, %v447_v28 }
 0x3bb   : > { %v611_v31 = vpop.f32.mrb[4].mxu1 }
 0x3bc   : > { %v615_v32 = vmul.f32 0.25, %v611_v31  ;;  %v1063_v33 = vpop.f32.mrb[5].mxu1  ;;  %v449_v34 = vsel %vm284_vm2, %v448_v30, -inf }
 0x3bd   : > { %450 = vmax.xlane.f32.xlu1 %v449_v34 }
 0x3be   : > { %v616_v35 = vadd.f32 %v1007_v5, %v615_v32 }
 0x3bf   : > { %v778_v36 = vpop.f32.mrb[6].mxu1 }
 0x3c0   : > { %v782_v37 = vmul.f32 0.25, %v778_v36  ;;  %v1073_v38 = vpop.f32.mrb[7].mxu1  ;;  %v617_v39 = vsel %vm284_vm2, %v616_v35, -inf }
 0x3c1   : > { %618 = vmax.xlane.f32.xlu0 %v617_v39 }
 0x3c2   : > { %v783_v40 = vadd.f32 %v1007_v5, %v782_v37 }
 0x3c4   : > { %v784_v41 = vsel %vm284_vm2, %v783_v40, -inf }
 0x3c5   : > { %785 = vmax.xlane.f32.xlu1 %v784_v41 }
 0x3d6   : > { %628 = vrot.lane.b32.xlu1 %v1488_v15, %s1295_s4 }
 0x3d7   : > { %461 = vrot.lane.b32.xlu0 %v1488_v15, %s1293_s8 }
 0x44a   : > { %v451_v42 = vpop.xlane.xlu1 %450 }
 0x44b   : > { %v452_v43 = vsub.f32 %v448_v30, %v451_v42 }
 0x44d   : > { %v453_v44 = vmul.f32 1.442695, %v452_v43 }
 0x44e   : > { %v619_v45 = vpop.xlane.xlu0 %618 }
 0x44f   : > { %1143 = vpow2.f32 %v453_v44  ;;  %v620_v46 = vsub.f32 %v616_v35, %v619_v45 }
 0x451   : > { %v621_v47 = vmul.f32 1.442695, %v620_v46 }
 0x452   : > { %v786_v48 = vpop.xlane.xlu1 %785  ;;  %v462_v57 = vpop.permute.xlu0 %461 }
 0x453   : > { %1145 = vpow2.f32 %v621_v47  ;;  %v787_v49 = vsub.f32 %v783_v40, %v786_v48  ;;  %1055 = vmatpush3.msra.mxu0 %v462_v57 }
 0x454   : > { %1064 = vmatprep.subr.mxu0 %v1289_v0 }
 0x455   : > { %v788_v50 = vmul.f32 1.442695, %v787_v49 }
 0x456   : > { %v629_v58 = vpop.permute.xlu1 %628 }
 0x457   : > { %1147 = vpow2.f32 %v788_v50 }
 0x459   : > { %v1144_v51 = vpop.eup %1143 }
 0x45a   : > { %v455_v52 = vsel %vm284_vm2, %v1144_v51, 0.0 }
 0x45b   : > { %456 = vadd.xlane.f32.xlu1 %v455_v52 }
 0x45d   : > { %v1146_v53 = vpop.eup %1145 }
 0x45e   : > { %v623_v54 = vsel %vm284_vm2, %v1146_v53, 0.0 }
 0x45f   : > { %624 = vadd.xlane.f32.xlu1 %v623_v54 }
 0x461   : > { %v1148_v55 = vpop.eup %1147 }
 0x462   : > { %v790_v56 = vsel %vm284_vm2, %v1148_v55, 0.0 }
 0x463   : > { %791 = vadd.xlane.f32.xlu1 %v790_v56 }
 0x474   : > { %795 = vrot.lane.b32.xlu1 %v1488_v15, %s1296_s14 }
 0x4e8   : > { %v457_v59 = vpop.xlane.xlu1 %456 }
 0x4e9   : > { %1149 = vrcp.f32 %v457_v59 }
 0x4ec   : > { %v625_v60 = vpop.xlane.xlu1 %624 }
 0x4ed   : > { %1151 = vrcp.f32 %v625_v60 }
 0x4f0   : > { %v792_v61 = vpop.xlane.xlu1 %791 }
 0x4f1   : > { %1153 = vrcp.f32 %v792_v61 }
 0x4f3   : > { %v1150_v62 = vpop.eup %1149 }
 0x4f4   : > { %v459_v63 = vmul.f32 %v1150_v62, %v1144_v51  ;;  %v796_v3 = vpop.permute.xlu1 %795 }
 0x4f6   : > { %1057 = vmatmul.mubr.msk.f32.vlgmr.msra.gmra.mrb[2].mxu0 %vm284_vm2, %v459_v63 }
 0x4f7   : > { %v1152_v1 = vpop.eup %1151  ;;  %1065 = vmatpush3.msra.mxu0 %v629_v58  ;;  %1066 = vmatprep.mubr.msk.f32.mxu0 %vm1290_vm0, %v1289_v0 }
 0x4f8   : > { %v627_v2 = vmul.f32 %v1152_v1, %v1146_v53  ;;  %1074 = vmatprep.subr.mxu0 %v1289_v0 }
 0x4fa   : > { %1067 = vmatmul.mubr.msk.f32.vlgmr.msra.gmra.mrb[4].mxu0 %vm284_vm2, %v627_v2 }
 0x4fb   : > { %v1154_v4 = vpop.eup %1153  ;;  %1075 = vmatpush3.msra.mxu0 %v796_v3  ;;  %1076 = vmatprep.mubr.msk.f32.mxu0 %vm1290_vm0, %v1289_v0 }
 0x4fc   : > { %v794_v5 = vmul.f32 %v1154_v4, %v1148_v55 }
 0x4fe   : > { %1077 = vmatmul.mubr.msk.f32.vlgmr.msra.gmra.mrb[6].mxu0 %vm284_vm2, %v794_v5 }
 0x5c9   : > { %v533_v6 = vpop.f32.mrb[2].mxu0 }
 0x5ca   : > { %872 = vrot.lane.b32.xlu0 %v533_v6, %s1297_s16  ;;  %v1058_v7 = vpop.f32.mrb[3].mxu0 }
 0x5cd   : > { %v700_v8 = vpop.f32.mrb[4].mxu0 }
 0x5ce   : > { %876 = vrot.lane.b32.xlu1 %v700_v8, %s1294_s28  ;;  %v1068_v9 = vpop.f32.mrb[5].mxu0 }
 0x5d1   : > { %v867_v10 = vpop.f32.mrb[6].mxu0 }
 0x5d2   : > { %880 = vrot.lane.b32.xlu0 %v867_v10, %s1292_s20  ;;  %v1078_v11 = vpop.f32.mrb[7].mxu0 }
 0x63c   : > { %v873_v12 = vpop.permute.xlu0 %872 }
 0x63d   : > { %v883_v13 = vsel %vm201_vm1, %v1508_v25, %v873_v12 }
 0x640   : > { %v877_v0 = vpop.permute.xlu1 %876 }
 0x641   : > { %v885_v14 = vsel %vm884_vm3, %v883_v13, %v877_v0 }
 0x644   : > { %v881_v15 = vpop.permute.xlu0 %880 }
 0x645   : > { %v887_v16 = vsel %vm886_vm4, %v885_v14, %v881_v15 }
 0x646   : > { %v888_v17 = vpack.c.bf16 %v887_v16, %v887_v16 }
 0x648   : > { %890 = vst.msk [vmem:[%s193_s23] sm:$0xf] %vm889_vm5, %v888_v17 }
 0x649   : > { %1228 = shalt.err (!%p1225_p1)
}
 0x64a   : > { %s1229_s29 = scalar_lea.hbm %s1541_s5, 64  ;;  %s1233_s8 = scalar_lea.hbm %s1587_s2, 128 }
 0x64b   : > { %p1230_p11 = scmp.ne.s32.totalorder %s1541_s5, %s1229_s29  ;;  %p1234_p4 = scmp.lt.u32.totalorder %s1541_s5, %s1587_s2 }
 0x64c   : > { %p1235_p10 = scmp.lt.u32.totalorder %s1233_s8, %s1229_s29  ;;  %p1237_p6 = scmp.lt.u32.totalorder %s1229_s29, %s1541_s5 }
 0x64d   : > { %p1231_p12 = pnand %p1230_p11, %p1600_p13 }
 0x64e   : > { %p1236_p3 = por %p1235_p10, %p1234_p4 }
 0x64f   : > { %p1232_p2 = pneg %p1231_p12 }
 0x650   : > { %p1238_p7 = por %p1237_p6, %p1236_p3 }
 0x652   : > { %p1239_p5 = pnand %p1238_p7, %p1232_p2 }
 0x654   : > { %1242 = shalt.err (!%p1239_p5)
}
 0x655   : > { %1083 = dma.vmem_to_hbm [thread:$0]  (%p1600_p13), %s1543_s24, 64, %s1541_s5, %s892_s7  }
 0x656 PF: > { %s917_s14 = sand.u32 1, %s1273_s9   ;;  %p1601_p8 = scmp.ne.s32.totalorder %s1593_s22, 0 }
 0x657   : > { %p1602_p9 = scmp.ge.s32.totalorder %s1285_s12, 2  ;;  %s918_s16 = scalar_lea.sflag [#allocation4], %s917_s14 }
 0x659   : > { %p1093_p0 = pnand %p1602_p9, %p1601_p8 }
 0x65b   : > { %1268 = dma.done.wait (!%p1093_p0), %s918_s16, 64  }
 0x65c   : > { %1270 = vsyncadd (!%p1093_p0), %s918_s16, 4294967232  ;;  %p18_p1 = scmp.ge.s32.totalorder %s1339_s15, 4   ;;  %s1603_s9 = smov %s1277_s10 }
 0x65d   : > { %s1604_s10 = smov %s1281_s11  ;;  %s1605_s11 = smov %s1351_s18 }
 0x65e   : > { %s1606_s12 = smov %s1339_s15  ;;  %20 = sbr.rel (!%p18_p1) target bundleno = 7 (0x7), region = 86 }
 0x665   :  { %923 = vsyncpa [#allocation3], 1 }
 0x666   :  { %925 = vsyncpa [#allocation3 + $0x1], 1 }
 0x667   :  { %926 = vsyncpa [#allocation6], 1 }
 0x668   :  { %928 = vsyncpa [#allocation6 + $0x1], 1 }
 0x669   :  { %929 = vsyncpa [#allocation4], 1 }
 0x66a   :  { %931 = vsyncpa [#allocation4 + $0x1], 1 }

// kernel: albert_forward.20
= control target key start
LH: loop header
LB: loop body
LE: loop exit
PB: predicated region body
PF: predicated region fallthrough
CT: control target
= control target key end

     0   :  { %8 = vsyncpa [#allocation4], 0  ;;  %s498_s0 = inlined_call_operand.hbm [shape: bf16[16,64], index: 0, kind: input, shape index: {}]   ;;  %s499_s1 = inlined_call_operand.hbm [shape: bf16[64,256], index: 1, kind: input, shape index: {}]   ;;  %s500_s2 = inlined_call_operand.hbm [shape: bf16[1,256], index: 2, kind: input, shape index: {}]   ;;  %s501_s3 = inlined_call_operand.hbm [shape: bf16[16,256], index: 3, kind: output, shape index: {}]  }
   0x1   :  { %9 = vsyncpa [#allocation7], 0 }
   0x2   :  { %10 = vsyncpa [#allocation5], 0  ;;  %s415_s12 = smov [#allocation6]   ;;  %s321_s16 = scalar_lea.hbm %s499_s1, 1024 }
   0x3   :  { %s28_s13 = sshll.u32 %s415_s12, 4  ;;  %p322_p0 = scmp.ne.s32.totalorder %s499_s1, %s321_s16  ;;  %s29_s13 = int_to_ptr.vmem [resolvable:$true] %s28_s13 }
   0x4   :  { %p325_p1 = scmp.lt.u32.totalorder %s321_s16, %s499_s1 }
   0x6   :  { %p327_p2 = pnand %p325_p1, %p322_p0 }
   0x8   :  { %330 = shalt.err (!%p327_p2)
}
   0x9   :  { %s331_s21 = scalar_lea.vmem %s29_s13, 1024  ;;  %p336_p4 = scmp.lt.s32.totalorder %s29_s13, %s29_s13 }
   0xa   :  { %p332_p3 = scmp.ne.s32.totalorder %s29_s13, %s331_s21  ;;  %p337_p5 = scmp.lt.s32.totalorder %s331_s21, %s331_s21 }
   0xc   :  { %p338_p6 = por %p337_p5, %p336_p4 }
   0xe   :  { %p339_p7 = pnand %p338_p6, %p332_p3 }
  0x10   :  { %342 = shalt.err (!%p339_p7)
}
  0x11   :  { %s416_s22 = smov 128   ;;  %s417_s23 = smov 8  }
  0x12   :  { %34 = dma.hbm_to_vmem [thread:$0]  %s499_s1, 1024, %s29_s13, [#allocation7], %s416_s22, %s416_s22, %s417_s23  }
  0x13   :  { %s418_s26 = smov [#allocation3]   ;;  %s343_s30 = scalar_lea.hbm %s498_s0, 128 }
  0x14   :  { %s16_s27 = sshll.u32 %s418_s26, 4  ;;  %p344_p8 = scmp.ne.s32.totalorder %s498_s0, %s343_s30  ;;  %s17_s27 = int_to_ptr.vmem [resolvable:$true] %s16_s27 }
  0x15   :  { %p347_p9 = scmp.lt.u32.totalorder %s343_s30, %s498_s0 }
  0x17   :  { %p349_p10 = pnand %p347_p9, %p344_p8 }
  0x19   :  { %352 = shalt.err (!%p349_p10)
}
  0x1a   :  { %s353_s8 = scalar_lea.vmem %s17_s27, 128  ;;  %p358_p12 = scmp.lt.s32.totalorder %s17_s27, %s17_s27 }
  0x1b   :  { %p354_p11 = scmp.ne.s32.totalorder %s17_s27, %s353_s8  ;;  %p359_p13 = scmp.lt.s32.totalorder %s353_s8, %s353_s8 }
  0x1d   :  { %p360_p0 = por %p359_p13, %p358_p12 }
  0x1f   :  { %p361_p1 = pnand %p360_p0, %p354_p11 }
  0x21   :  { %364 = shalt.err (!%p361_p1)
}
  0x22   :  { %s419_s1 = smov 64   ;;  %s420_s9 = smov 4  }
  0x23   :  { %22 = dma.hbm_to_vmem [thread:$0]  %s498_s0, 128, %s17_s27, [#allocation4], %s419_s1, %s419_s1, %s420_s9  }
  0x24   :  { %s421_s12 = smov [#allocation8]   ;;  %s365_s16 = scalar_lea.hbm %s500_s2, 32 }
  0x25   :  { %s41_s13 = sshll.u32 %s421_s12, 4  ;;  %p366_p2 = scmp.ne.s32.totalorder %s500_s2, %s365_s16  ;;  %s42_s13 = int_to_ptr.vmem [resolvable:$true] %s41_s13 }
  0x26   :  { %p369_p3 = scmp.lt.u32.totalorder %s365_s16, %s500_s2 }
  0x28   :  { %p371_p4 = pnand %p369_p3, %p366_p2 }
  0x2a   :  { %374 = shalt.err (!%p371_p4)
}
  0x2b   :  { %s375_s21 = scalar_lea.vmem %s42_s13, 32  ;;  %p380_p6 = scmp.lt.s32.totalorder %s42_s13, %s42_s13 }
  0x2c   :  { %p376_p5 = scmp.ne.s32.totalorder %s42_s13, %s375_s21  ;;  %p381_p7 = scmp.lt.s32.totalorder %s375_s21, %s375_s21 }
  0x2e   :  { %p382_p8 = por %p381_p7, %p380_p6 }
  0x30   :  { %p383_p9 = pnand %p382_p8, %p376_p5 }
  0x32   :  { %386 = shalt.err (!%p383_p9)
}
  0x33   :  { %44 = dma.hbm_to_vmem [thread:$0]  %s500_s2, 32, %s42_s13, [#allocation7]  }
  0x34   :  { %409 = dma.done.wait [#allocation4], 128  }
  0x35   :  { %410 = vsyncadd [#allocation4], 4294967168 }
  0x36   :  { %411 = dma.done.wait [#allocation7], 1056  }
  0x37   :  { %412 = vsyncadd [#allocation7], 4294966240  ;;  %v422_v0 = vmov 0   ;;  %v300_v1 = vld [vmem:[#allocation6 + $0x4] ss:$8 sps:$4 sm:$0xff]   ;;  %v312_v9 = vld [vmem:[#allocation3] sm:$0xff]   ;;  %v187_v10 = vlaneseq }
  0x38   :  { %158 = vmatprep.mubr.bf16.mxu0 %v422_v0  ;;  %v302_v2 = vld [vmem:[#allocation6] ss:$8 sps:$4 sm:$0xff]   ;;  %126 = vmatprep.subr.bf16.mxu0 %v300_v1  ;;  %v303_v3 = vld [vmem:[#allocation6 + $0x14] ss:$8 sps:$4 sm:$0xff]   ;;  %v305_v4 = vld [vmem:[#allocation6 + $0x10] ss:$8 sps:$4 sm:$0xff]  }
  0x39   :  { %127 = vmatpush1.bf16.msra.mxu0 %v302_v2  ;;  %v306_v5 = vld [vmem:[#allocation6 + $0x24] ss:$8 sps:$4 sm:$0xff]   ;;  %v308_v6 = vld [vmem:[#allocation6 + $0x20] ss:$8 sps:$4 sm:$0xff]   ;;  %v309_v7 = vld [vmem:[#allocation6 + $0x34] ss:$8 sps:$4 sm:$0xff]  }
  0x3a   :  { %128 = vmatprep.subr.bf16.mxu0 %v303_v3  ;;  %v311_v8 = vld [vmem:[#allocation6 + $0x30] ss:$8 sps:$4 sm:$0xff]   ;;  %vm122_vm0 = vcmask 523264   ;;  %v188_v11 = vshrl.u32 %v187_v10, 7  ;;  %v184_v12 = vld [vmem:[#allocation8] sm:$0x3] }
  0x3b   :  { %v185_v13 = vunpack.c.l.bf16 %v184_v12  ;;  %s423_s2 = smov [#allocation9]  }
  0x3c   :  { %v189_v14 = vsub.s32 0, %v188_v11  ;;  %v193_v15 = vsub.s32 2, %v188_v11  ;;  %s264_s25 = sshll.u32 %s423_s2, 4  ;;  %s265_s25 = int_to_ptr.vmem [resolvable:$true] %s264_s25 }
  0x3d   :  { %129 = vmatpush1.bf16.msra.mxu0 %v305_v4  ;;  %s387_s26 = scalar_lea.vmem %s265_s25, 256  ;;  %p392_p11 = scmp.lt.s32.totalorder %s265_s25, %s265_s25 }
  0x3e   :  { %130 = vmatprep.subr.bf16.mxu0 %v306_v5  ;;  %v190_v16 = vrot.slane %v185_v13, %v189_v14  ;;  %v194_v17 = vrot.slane %v185_v13, %v193_v15  ;;  %p388_p10 = scmp.ne.s32.totalorder %s265_s25, %s387_s26  ;;  %p393_p12 = scmp.lt.s32.totalorder %s387_s26, %s387_s26 }
  0x40   :  { %v200_v18 = vrot.slane %v190_v16, %v189_v14  ;;  %v204_v19 = vrot.slane %v194_v17, %v189_v14  ;;  %p394_p13 = por %p393_p12, %p392_p11 }
  0x41   :  { %131 = vmatpush1.bf16.msra.mxu0 %v308_v6 }
  0x42   :  { %132 = vmatprep.subr.bf16.mxu0 %v309_v7  ;;  %p395_p0 = pnand %p394_p13, %p388_p10 }
  0x45   :  { %133 = vmatpush1.bf16.msra.mxu0 %v311_v8 }
  0x48   :  { %286 = vmatmul.mubr.msk.bf16.vlgmr.msra.gmra.mrb[0].mxu0 %vm122_vm0, %v312_v9 }
 0x11b   :  { %v160_v20 = vpop.f32.mrb[0].mxu0 }
 0x11c   :  { %v205_v21 = vadd.f32 %v200_v18, %v160_v20  ;;  %v162_v22 = vpop.f32.mrb[1].mxu0 }
 0x11d   :  { %v206_v23 = vadd.f32 %v204_v19, %v162_v22  ;;  %v164_v24 = vpop.f32.mrb[2].mxu0 }
 0x11e   :  { %v209_v25 = vmul.f32 %v205_v21, %v205_v21  ;;  %v207_v26 = vadd.f32 %v200_v18, %v164_v24  ;;  %v166_v27 = vpop.f32.mrb[3].mxu0 }
 0x11f   :  { %v210_v28 = vmul.f32 %v206_v23, %v206_v23  ;;  %v208_v29 = vadd.f32 %v204_v19, %v166_v27 }
 0x120   :  { %v213_v30 = vmul.f32 %v209_v25, %v205_v21  ;;  %v211_v31 = vmul.f32 %v207_v26, %v207_v26 }
 0x121   :  { %v214_v32 = vmul.f32 %v210_v28, %v206_v23  ;;  %v212_v33 = vmul.f32 %v208_v29, %v208_v29 }
 0x122   :  { %v217_v34 = vmul.f32 0.044715, %v213_v30  ;;  %v215_v35 = vmul.f32 %v211_v31, %v207_v26 }
 0x123   :  { %v218_v36 = vmul.f32 0.044715, %v214_v32  ;;  %v216_v37 = vmul.f32 %v212_v33, %v208_v29 }
 0x124   :  { %v221_v38 = vadd.f32 %v217_v34, %v205_v21  ;;  %v219_v39 = vmul.f32 0.044715, %v215_v35 }
 0x125   :  { %v222_v40 = vadd.f32 %v218_v36, %v206_v23  ;;  %v220_v41 = vmul.f32 0.044715, %v216_v37 }
 0x126   :  { %v225_v42 = vmul.f32 0.7978846, %v221_v38  ;;  %v223_v43 = vadd.f32 %v219_v39, %v207_v26 }
 0x127   :  { %v226_v44 = vmul.f32 0.7978846, %v222_v40  ;;  %v224_v45 = vadd.f32 %v220_v41, %v208_v29 }
 0x128   :  { %313 = vtanh.f32 %v225_v42  ;;  %v227_v46 = vmul.f32 0.7978846, %v223_v43 }
 0x129   :  { %315 = vtanh.f32 %v226_v44  ;;  %v228_v47 = vmul.f32 0.7978846, %v224_v45 }
 0x12a   :  { %317 = vtanh.f32 %v227_v46 }
 0x12b   :  { %319 = vtanh.f32 %v228_v47 }
 0x132   :  { %v314_v48 = vpop.eup %313 }
 0x133   :  { %v316_v49 = vpop.eup %315  ;;  %v233_v50 = vadd.f32 1.0, %v314_v48 }
 0x134   :  { %v318_v51 = vpop.eup %317  ;;  %v234_v52 = vadd.f32 1.0, %v316_v49 }
 0x135   :  { %v320_v53 = vpop.eup %319  ;;  %v235_v54 = vadd.f32 1.0, %v318_v51  ;;  %v237_v55 = vmul.f32 0.5, %v233_v50 }
 0x136   :  { %v236_v56 = vadd.f32 1.0, %v320_v53  ;;  %v238_v57 = vmul.f32 0.5, %v234_v52 }
 0x137   :  { %v239_v58 = vmul.f32 0.5, %v235_v54  ;;  %v241_v59 = vmul.f32 %v237_v55, %v205_v21 }
 0x138   :  { %v240_v60 = vmul.f32 0.5, %v236_v56  ;;  %v242_v61 = vmul.f32 %v238_v57, %v206_v23 }
 0x139   :  { %v243_v62 = vmul.f32 %v239_v58, %v207_v26 }
 0x13a   :  { %v244_v63 = vmul.f32 %v240_v60, %v208_v29  ;;  %v289_v0 = vpack.c.bf16 %v242_v61, %v241_v59 }
 0x13c   :  { %v290_v1 = vpack.c.bf16 %v244_v63, %v243_v62  ;;  %257 = vst [vmem:[#allocation9] sm:$0xff] %v289_v0 }
 0x13e   :  { %258 = vst [vmem:[#allocation9 + $0x8] sm:$0xff] %v290_v1 }
 0x13f   :  { %398 = shalt.err (!%p395_p0)
}
 0x140   :  { %s399_s29 = scalar_lea.hbm %s501_s3, 256 }
 0x141   :  { %p400_p1 = scmp.ne.s32.totalorder %s501_s3, %s399_s29  ;;  %p403_p2 = scmp.lt.u32.totalorder %s399_s29, %s501_s3 }
 0x143   :  { %p405_p3 = pnand %p403_p2, %p400_p1 }
 0x145   :  { %408 = shalt.err (!%p405_p3)
}
 0x146   :  { %270 = dma.vmem_to_hbm [thread:$0]  %s265_s25, 256, %s501_s3, [#allocation5], %s416_s22, %s416_s22, %s417_s23  }
 0x147   :  { %413 = dma.done.wait [#allocation5], 256  }
 0x148   :  { %414 = vsyncadd [#allocation5], 4294967040 }
 0x149   :  { %274 = vsyncpa [#allocation4], 1 }
 0x14a   :  { %275 = vsyncpa [#allocation7], 1 }
 0x14b   :  { %276 = vsyncpa [#allocation5], 1 }

// kernel: albert_forward.21
= control target key start
LH: loop header
LB: loop body
LE: loop exit
PB: predicated region body
PF: predicated region fallthrough
CT: control target
= control target key end

     0   :  { %11 = vsyncpa [#allocation4], 0  ;;  %s784_s0 = inlined_call_operand.hbm [shape: bf16[16,256], index: 0, kind: input, shape index: {}]   ;;  %s785_s1 = inlined_call_operand.hbm [shape: bf16[256,64], index: 1, kind: input, shape index: {}]   ;;  %s786_s2 = inlined_call_operand.hbm [shape: bf16[1,64], index: 2, kind: input, shape index: {}]   ;;  %s787_s3 = inlined_call_operand.hbm [shape: bf16[16,64], index: 3, kind: input, shape index: {}]   ;;  %s788_s4 = inlined_call_operand.hbm [shape: bf16[1,64], index: 4, kind: input, shape index: {}]   ;;  %s789_s5 = inlined_call_operand.hbm [shape: bf16[1,64], index: 5, kind: input, shape index: {}]   ;;  %s790_s6 = inlined_call_operand.hbm [shape: bf16[16,64], index: 6, kind: output, shape index: {}]  }
   0x1   :  { %12 = vsyncpa [#allocation7], 0 }
   0x2   :  { %13 = vsyncpa [#allocation10], 0 }
   0x3   :  { %14 = vsyncpa [#allocation13], 0 }
   0x4   :  { %15 = vsyncpa [#allocation5], 0  ;;  %s636_s21 = smov [#allocation6]   ;;  %s472_s25 = scalar_lea.hbm %s785_s1, 2048 }
   0x5   :  { %s33_s22 = sshll.u32 %s636_s21, 4  ;;  %p473_p0 = scmp.ne.s32.totalorder %s785_s1, %s472_s25  ;;  %s34_s22 = int_to_ptr.vmem [resolvable:$true] %s33_s22 }
   0x6   :  { %p476_p1 = scmp.lt.u32.totalorder %s472_s25, %s785_s1 }
   0x8   :  { %p478_p2 = pnand %p476_p1, %p473_p0 }
   0xa   :  { %481 = shalt.err (!%p478_p2)
}
   0xb   :  { %s482_s30 = scalar_lea.vmem %s34_s22, 2048  ;;  %p487_p4 = scmp.lt.s32.totalorder %s34_s22, %s34_s22 }
   0xc   :  { %p483_p3 = scmp.ne.s32.totalorder %s34_s22, %s482_s30  ;;  %p488_p5 = scmp.lt.s32.totalorder %s482_s30, %s482_s30 }
   0xe   :  { %p489_p6 = por %p488_p5, %p487_p4 }
  0x10   :  { %p490_p7 = pnand %p489_p6, %p483_p3 }
  0x12   :  { %493 = shalt.err (!%p490_p7)
}
  0x13   :  { %s637_s7 = smov 64   ;;  %s638_s8 = smov 4  }
  0x14   :  { %39 = dma.hbm_to_vmem [thread:$0]  %s785_s1, 2048, %s34_s22, [#allocation7], %s637_s7, %s637_s7, %s638_s8  }
  0x15   :  { %s639_s11 = smov [#allocation9]   ;;  %s640_s13 = smov [#allocation3]  }
  0x16   :  { %s55_s12 = sshll.u32 %s639_s11, 4  ;;  %s21_s14 = sshll.u32 %s640_s13, 4  ;;  %s56_s12 = int_to_ptr.vmem [resolvable:$true] %s55_s12  ;;  %s22_s14 = int_to_ptr.vmem [resolvable:$true] %s21_s14 }
  0x17   :  { %s494_s17 = scalar_lea.hbm %s787_s3, 128 }
  0x18   :  { %p495_p8 = scmp.ne.s32.totalorder %s787_s3, %s494_s17  ;;  %p498_p9 = scmp.lt.u32.totalorder %s494_s17, %s787_s3 }
  0x1a   :  { %p500_p10 = pnand %p498_p9, %p495_p8 }
  0x1c   :  { %503 = shalt.err (!%p500_p10)
}
  0x1d   :  { %s504_s1 = scalar_lea.vmem %s56_s12, 128  ;;  %p509_p12 = scmp.lt.s32.totalorder %s56_s12, %s56_s12 }
  0x1e   :  { %p505_p11 = scmp.ne.s32.totalorder %s56_s12, %s504_s1  ;;  %p510_p13 = scmp.lt.s32.totalorder %s504_s1, %s504_s1 }
  0x20   :  { %p511_p0 = por %p510_p13, %p509_p12 }
  0x22   :  { %p512_p1 = pnand %p511_p0, %p505_p11 }
  0x24   :  { %515 = shalt.err (!%p512_p1)
}
  0x25   :  { %61 = dma.hbm_to_vmem [thread:$0]  %s787_s3, 128, %s56_s12, [#allocation10], %s637_s7, %s637_s7, %s638_s8  }
  0x26   :  { %s516_s26 = scalar_lea.hbm %s784_s0, 256 }
  0x27   :  { %p517_p2 = scmp.ne.s32.totalorder %s784_s0, %s516_s26  ;;  %p520_p3 = scmp.lt.u32.totalorder %s516_s26, %s784_s0 }
  0x29   :  { %p522_p4 = pnand %p520_p3, %p517_p2 }
  0x2b   :  { %525 = shalt.err (!%p522_p4)
}
  0x2c   :  { %s526_s9 = scalar_lea.vmem %s22_s14, 256  ;;  %p531_p6 = scmp.lt.s32.totalorder %s22_s14, %s22_s14 }
  0x2d   :  { %p527_p5 = scmp.ne.s32.totalorder %s22_s14, %s526_s9  ;;  %p532_p7 = scmp.lt.s32.totalorder %s526_s9, %s526_s9 }
  0x2f   :  { %p533_p8 = por %p532_p7, %p531_p6 }
  0x31   :  { %p534_p9 = pnand %p533_p8, %p527_p5 }
  0x33   :  { %537 = shalt.err (!%p534_p9)
}
  0x34   :  { %s641_s3 = smov 128   ;;  %s642_s10 = smov 8  }
  0x35   :  { %27 = dma.hbm_to_vmem [thread:$0]  %s784_s0, 256, %s22_s14, [#allocation4], %s641_s3, %s641_s3, %s642_s10  }
  0x36   :  { %s643_s13 = smov [#allocation8]   ;;  %s644_s16 = smov [#allocation11]  }
  0x37   :  { %s46_s15 = sshll.u32 %s643_s13, 4  ;;  %s68_s17 = sshll.u32 %s644_s16, 4  ;;  %s47_s15 = int_to_ptr.vmem [resolvable:$true] %s46_s15  ;;  %s69_s17 = int_to_ptr.vmem [resolvable:$true] %s68_s17 }
  0x38   :  { %s538_s20 = scalar_lea.hbm %s786_s2, 16 }
  0x39   :  { %p539_p10 = scmp.ne.s32.totalorder %s786_s2, %s538_s20  ;;  %p542_p11 = scmp.lt.u32.totalorder %s538_s20, %s786_s2 }
  0x3b   :  { %p544_p12 = pnand %p542_p11, %p539_p10 }
  0x3d   :  { %547 = shalt.err (!%p544_p12)
}
  0x3e   :  { %s548_s0 = scalar_lea.vmem %s47_s15, 16  ;;  %s552_s14 = scalar_lea.vmem %s47_s15, 32 }
  0x3f   :  { %p549_p13 = scmp.ne.s32.totalorder %s47_s15, %s548_s0  ;;  %p553_p0 = scmp.lt.s32.totalorder %s47_s15, %s47_s15 }
  0x40   :  { %p554_p1 = scmp.lt.s32.totalorder %s552_s14, %s548_s0 }
  0x42   :  { %p555_p2 = por %p554_p1, %p553_p0 }
  0x44   :  { %p556_p3 = pnand %p555_p2, %p549_p13 }
  0x46   :  { %559 = shalt.err (!%p556_p3)
}
  0x47   :  { %49 = dma.hbm_to_vmem [thread:$0]  %s786_s2, 16, %s47_s15, [#allocation7]  }
  0x48   :  { %s560_s28 = scalar_lea.hbm %s788_s4, 16 }
  0x49   :  { %p561_p4 = scmp.ne.s32.totalorder %s788_s4, %s560_s28  ;;  %p564_p5 = scmp.lt.u32.totalorder %s560_s28, %s788_s4 }
  0x4b   :  { %p566_p6 = pnand %p564_p5, %p561_p4 }
  0x4d   :  { %569 = shalt.err (!%p566_p6)
}
  0x4e   :  { %s570_s10 = scalar_lea.vmem %s69_s17, 16  ;;  %s574_s11 = scalar_lea.vmem %s69_s17, 32 }
  0x4f   :  { %p571_p7 = scmp.ne.s32.totalorder %s69_s17, %s570_s10  ;;  %p575_p8 = scmp.lt.s32.totalorder %s69_s17, %s69_s17 }
  0x50   :  { %p576_p9 = scmp.lt.s32.totalorder %s574_s11, %s570_s10 }
  0x52   :  { %p577_p10 = por %p576_p9, %p575_p8 }
  0x54   :  { %p578_p11 = pnand %p577_p10, %p571_p7 }
  0x56   :  { %581 = shalt.err (!%p578_p11)
}
  0x57   :  { %71 = dma.hbm_to_vmem [thread:$0]  %s788_s4, 16, %s69_s17, [#allocation10]  }
  0x58   :  { %s645_s13 = smov [#allocation12]   ;;  %s582_s19 = scalar_lea.hbm %s789_s5, 16 }
  0x59   :  { %s78_s15 = sshll.u32 %s645_s13, 4  ;;  %p583_p12 = scmp.ne.s32.totalorder %s789_s5, %s582_s19  ;;  %s79_s15 = int_to_ptr.vmem [resolvable:$true] %s78_s15 }
  0x5a   :  { %p586_p13 = scmp.lt.u32.totalorder %s582_s19, %s789_s5 }
  0x5c   :  { %p588_p0 = pnand %p586_p13, %p583_p12 }
  0x5e   :  { %591 = shalt.err (!%p588_p0)
}
  0x5f   :  { %s592_s23 = scalar_lea.vmem %s79_s15, 16  ;;  %s596_s4 = scalar_lea.vmem %s79_s15, 32 }
  0x60   :  { %p593_p1 = scmp.ne.s32.totalorder %s79_s15, %s592_s23  ;;  %p597_p2 = scmp.lt.s32.totalorder %s79_s15, %s79_s15 }
  0x61   :  { %p598_p3 = scmp.lt.s32.totalorder %s596_s4, %s592_s23 }
  0x63   :  { %p599_p4 = por %p598_p3, %p597_p2 }
  0x65   :  { %p600_p5 = pnand %p599_p4, %p593_p1 }
  0x67   :  { %603 = shalt.err (!%p600_p5)
}
  0x68   :  { %81 = dma.hbm_to_vmem [thread:$0]  %s789_s5, 16, %s79_s15, [#allocation13]  }
  0x69   :  { %626 = dma.done.wait [#allocation4], 256  }
  0x6a   :  { %627 = vsyncadd [#allocation4], 4294967040 }
  0x6b   :  { %628 = dma.done.wait [#allocation7], 2064  }
  0x6c   :  { %629 = vsyncadd [#allocation7], 4294965232 }
  0x6d   :  { %630 = dma.done.wait [#allocation10], 144  }
  0x6e   :  { %631 = vsyncadd [#allocation10], 4294967152 }
  0x6f   :  { %632 = dma.done.wait [#allocation13], 16  }
  0x70   :  { %633 = vsyncadd [#allocation13], 4294967280  ;;  %v449_v0 = vld [vmem:[#allocation6 + $0x40] sm:$0xff]   ;;  %v451_v2 = vld [vmem:[#allocation6 + $0x48] sm:$0xff]   ;;  %vm105_vm0 = vcmask 523264   ;;  %v646_v18 = vmov 0.0   ;;  %v303_v19 = vlaneseq }
  0x71   :  { %v450_v1 = vld [vmem:[#allocation6] sm:$0xff]   ;;  %415 = vmatprep.subr.bf16.mxu0 %v449_v0  ;;  %v452_v3 = vld [vmem:[#allocation6 + $0x8] sm:$0xff]   ;;  %v453_v4 = vld [vmem:[#allocation6 + $0x50] sm:$0xff]   ;;  %106 = vst.msk [vmem:[#allocation2] sm:$0xff] %vm105_vm0, %v646_v18  ;;  %vm366_vm1 = vcmask 519168   ;;  %s647_s5 = smov [#allocation14]  }
  0x72   :  { %416 = vmatpush3.bf16.msra.mxu0 %v450_v1  ;;  %v454_v5 = vld [vmem:[#allocation6 + $0x10] sm:$0xff]   ;;  %v455_v6 = vld [vmem:[#allocation6 + $0x58] sm:$0xff]   ;;  %v457_v8 = vld [vmem:[#allocation6 + $0x60] sm:$0xff]   ;;  %107 = vst.msk [vmem:[#allocation2 + $0x8] sm:$0xff] %vm105_vm0, %v646_v18  ;;  %v304_v25 = vshrl.u32 %v303_v19, 7  ;;  %s374_s14 = sshll.u32 %s647_s5, 4  ;;  %s375_s14 = int_to_ptr.vmem [resolvable:$true] %s374_s14 }
  0x73   :  { %417 = vmatprep.subr.bf16.mxu0 %v451_v2  ;;  %v456_v7 = vld [vmem:[#allocation6 + $0x18] sm:$0xff]   ;;  %v458_v9 = vld [vmem:[#allocation6 + $0x20] sm:$0xff]   ;;  %v459_v10 = vld [vmem:[#allocation6 + $0x68] sm:$0xff]   ;;  %s604_s24 = scalar_lea.vmem %s375_s14, 128  ;;  %p609_p7 = scmp.lt.s32.totalorder %s375_s14, %s375_s14 }
  0x74   :  { %v467_v11 = vld [vmem:[#allocation3 + $0x4] ss:$8 sps:$4 sm:$0xff]   ;;  %v460_v12 = vld [vmem:[#allocation6 + $0x28] sm:$0xff]   ;;  %v465_v17 = vld [vmem:[#allocation3] ss:$8 sps:$4 sm:$0xff]   ;;  %v305_v33 = vsub.s32 0, %v304_v25  ;;  %p605_p6 = scmp.ne.s32.totalorder %s375_s14, %s604_s24  ;;  %p610_p8 = scmp.lt.s32.totalorder %s604_s24, %s604_s24 }
  0x75   :  { %282 = vmatprep.mubr.bf16.mxu0 %v467_v11  ;;  %v461_v13 = vld [vmem:[#allocation6 + $0x70] sm:$0xff]   ;;  %v463_v15 = vld [vmem:[#allocation6 + $0x78] sm:$0xff]   ;;  %v301_v28 = vld [vmem:[#allocation8] sm:$0x1] }
  0x76   :  { %418 = vmatpush3.bf16.msra.mxu0 %v452_v3  ;;  %v462_v14 = vld [vmem:[#allocation6 + $0x30] sm:$0xff]   ;;  %v464_v16 = vld [vmem:[#allocation6 + $0x38] sm:$0xff]   ;;  %v302_v32 = vunpack.c.l.bf16 %v301_v28  ;;  %v412_v34 = vld [vmem:[#allocation9] sm:$0xff]   ;;  %p611_p9 = por %p610_p8, %p609_p7 }
  0x77   :  { %419 = vmatprep.subr.bf16.mxu0 %v453_v4  ;;  %v413_v36 = vunpack.c.l.bf16 %v412_v34  ;;  %v414_v39 = vunpack.c.h.bf16 %v412_v34  ;;  %v342_v62 = vld [vmem:[#allocation11] sm:$0x1]  ;;  %v350_v63 = vld [vmem:[#allocation12] sm:$0x1] }
  0x78   :  { %v108_v21 = vld [vmem:[#allocation2] sm:$0xff]  ;;  %v306_v35 = vrot.slane %v302_v32, %v305_v33  ;;  %v343_v0 = vunpack.c.l.bf16 %v342_v62  ;;  %v351_v1 = vunpack.c.l.bf16 %v350_v63  ;;  %p612_p10 = pnand %p611_p9, %p605_p6 }
  0x79   :  { %v109_v26 = vld [vmem:[#allocation2 + $0x8] sm:$0xff] }
  0x7a   :  { %420 = vmatpush3.bf16.msra.mxu0 %v454_v5  ;;  %v347_v2 = vrot.slane %v343_v0, %v305_v33  ;;  %v355_v5 = vrot.slane %v351_v1, %v305_v33 }
  0x7b   :  { %421 = vmatprep.subr.bf16.mxu0 %v455_v6 }
  0x7e   :  { %422 = vmatpush3.bf16.msra.mxu0 %v456_v7 }
  0x7f   :  { %423 = vmatprep.subr.bf16.mxu0 %v457_v8 }
  0x82   :  { %424 = vmatpush3.bf16.msra.mxu0 %v458_v9 }
  0x83   :  { %425 = vmatprep.subr.bf16.mxu0 %v459_v10 }
  0x86   :  { %426 = vmatpush3.bf16.msra.mxu0 %v460_v12 }
  0x87   :  { %427 = vmatprep.subr.bf16.mxu0 %v461_v13 }
  0x8a   :  { %428 = vmatpush3.bf16.msra.mxu0 %v462_v14 }
  0x8b   :  { %429 = vmatprep.subr.bf16.mxu0 %v463_v15 }
  0x8e   :  { %430 = vmatpush3.bf16.msra.mxu0 %v464_v16 }
  0x91   :  { %283 = vmatmul.mubr.bf16.vlgmr.msra.gmra.mrb[0].mxu0 %v465_v17 }
 0x164   :  { %v431_v20 = vpop.f32.mrb[0].mxu0 }
 0x165   :  { %v432_v22 = vpop.f32.mrb[1].mxu0 }
 0x166   :  { %v433_v23 = vadd.f32 %v432_v22, %v431_v20  ;;  %v434_v24 = vpop.f32.mrb[2].mxu0 }
 0x167   :  { %v435_v27 = vpop.f32.mrb[3].mxu0 }
 0x168   :  { %v291_v29 = vadd.f32 %v433_v23, %v108_v21  ;;  %v436_v30 = vadd.f32 %v435_v27, %v434_v24 }
 0x16a   :  { %294 = vst.msk [vmem:[#allocation2] sm:$0xff] %vm105_vm0, %v291_v29  ;;  %v292_v31 = vadd.f32 %v436_v30, %v109_v26 }
 0x16c   :  { %295 = vst.msk [vmem:[#allocation2 + $0x8] sm:$0xff] %vm105_vm0, %v292_v31 }
 0x171   :  { %v299_v37 = vld [vmem:[#allocation2] sm:$0xff] }
 0x172   :  { %v307_v38 = vadd.f32 %v306_v35, %v299_v37 }
 0x173   :  { %v300_v40 = vld [vmem:[#allocation2 + $0x8] sm:$0xff] }
 0x174   :  { %v313_v41 = vadd.f32 %v413_v36, %v307_v38  ;;  %v308_v42 = vadd.f32 %v306_v35, %v300_v40 }
 0x176   :  { %v315_v43 = vsel %vm105_vm0, %v313_v41, 0.0  ;;  %v314_v44 = vadd.f32 %v414_v39, %v308_v42 }
 0x177   :  { %316 = vadd.xlane.f32.xlu0 %v315_v43 }
 0x178   :  { %v318_v45 = vsel %vm105_vm0, %v314_v44, 0.0 }
 0x17b   :  { %319 = vadd.xlane.f32.xlu0 %v318_v45 }
 0x204   :  { %v317_v46 = vpop.xlane.xlu0 %316 }
 0x205   :  { %v322_v47 = vmul.f32 0.015625, %v317_v46 }
 0x207   :  { %v324_v48 = vsub.f32 %v313_v41, %v322_v47 }
 0x208   :  { %v320_v49 = vpop.xlane.xlu0 %319 }
 0x209   :  { %v323_v50 = vmul.f32 0.015625, %v320_v49  ;;  %v326_v51 = vmul.f32 %v324_v48, %v324_v48 }
 0x20b   :  { %v325_v52 = vsub.f32 %v314_v44, %v323_v50  ;;  %v328_v53 = vsel %vm105_vm0, %v326_v51, 0.0 }
 0x20c   :  { %329 = vadd.xlane.f32.xlu1 %v328_v53 }
 0x20d   :  { %v327_v54 = vmul.f32 %v325_v52, %v325_v52 }
 0x20f   :  { %v331_v55 = vsel %vm105_vm0, %v327_v54, 0.0 }
 0x210   :  { %332 = vadd.xlane.f32.xlu1 %v331_v55 }
 0x299   :  { %v330_v56 = vpop.xlane.xlu1 %329 }
 0x29a   :  { %v334_v57 = vmul.f32 0.015625, %v330_v56 }
 0x29c   :  { %v336_v58 = vadd.f32 1e-05, %v334_v57 }
 0x29d   :  { %v333_v59 = vpop.xlane.xlu1 %332 }
 0x29e   :  { %468 = vrsqrt.f32 %v336_v58  ;;  %v335_v60 = vmul.f32 0.015625, %v333_v59 }
 0x2a0   :  { %v337_v61 = vadd.f32 1e-05, %v335_v60 }
 0x2a2   :  { %470 = vrsqrt.f32 %v337_v61 }
 0x2a8   :  { %v469_v3 = vpop.eup %468 }
 0x2a9   :  { %v340_v4 = vmul.f32 %v469_v3, %v324_v48 }
 0x2ab   :  { %v348_v6 = vmul.f32 %v347_v2, %v340_v4 }
 0x2ac   :  { %v471_v7 = vpop.eup %470 }
 0x2ad   :  { %v341_v8 = vmul.f32 %v471_v7, %v325_v52  ;;  %v356_v9 = vadd.f32 %v355_v5, %v348_v6 }
 0x2af   :  { %v349_v10 = vmul.f32 %v347_v2, %v341_v8  ;;  %v409_v11 = vpack.c.bf16 %v356_v9, %v356_v9 }
 0x2b1   :  { %v357_v12 = vadd.f32 %v355_v5, %v349_v10  ;;  %367 = vst.msk [vmem:[#allocation14] sm:$0xf] %vm366_vm1, %v409_v11 }
 0x2b3   :  { %v410_v13 = vpack.c.bf16 %v357_v12, %v357_v12 }
 0x2b5   :  { %368 = vst.msk [vmem:[#allocation14 + $0x4] sm:$0xf] %vm366_vm1, %v410_v13 }
 0x2b6   :  { %615 = shalt.err (!%p612_p10)
}
 0x2b7   :  { %s616_s27 = scalar_lea.hbm %s790_s6, 128 }
 0x2b8   :  { %p617_p11 = scmp.ne.s32.totalorder %s790_s6, %s616_s27  ;;  %p620_p12 = scmp.lt.u32.totalorder %s616_s27, %s790_s6 }
 0x2ba   :  { %p622_p13 = pnand %p620_p12, %p617_p11 }
 0x2bc   :  { %625 = shalt.err (!%p622_p13)
}
 0x2bd   :  { %380 = dma.vmem_to_hbm [thread:$0]  %s375_s14, 128, %s790_s6, [#allocation5], %s637_s7, %s637_s7, %s638_s8  }
 0x2be   :  { %634 = dma.done.wait [#allocation5], 128  }
 0x2bf   :  { %635 = vsyncadd [#allocation5], 4294967168 }
 0x2c0   :  { %384 = vsyncpa [#allocation4], 1 }
 0x2c1   :  { %385 = vsyncpa [#allocation7], 1 }
 0x2c2   :  { %386 = vsyncpa [#allocation10], 1 }
 0x2c3   :  { %387 = vsyncpa [#allocation13], 1 }
 0x2c4   :  { %388 = vsyncpa [#allocation5], 1 }

</bundles_post_ra>
